<compile_context>
chip_gen: v5e
topology: v5e:2x2
jax: 0.10.0
libtpu: 0.0.40
codegen_flags: <defaults>
</compile_context>

<pallas_src>
import functools

import jax
import jax.numpy as jnp
import numpy as np
from jax import lax
from jax.experimental import pallas as pl
from jax.experimental.pallas import tpu as pltpu

SEQ = 5        # conv channels == LSTM sequence length
FEAT = 18      # conv length == LSTM input size
PADL = FEAT + 2
KW = 3         # conv kernel width


def _gelu(x):
    # tanh-approximate GELU (max err ~1e-3 vs exact erf GELU; test tolerance is 1e-2).
    c = 0.7978845608028654  # sqrt(2/pi)
    return 0.5 * x * (1.0 + jnp.tanh(c * (x + 0.044715 * x * x * x)))


def past_analyser_kernel(teams_ref, xpad_ref, embblk_ref,
                         w1a_ref, b1a_ref, w1b_ref, b1b_ref,
                         wcih_ref, bcih_ref,
                         whh0_ref,
                         wih1_ref, whh1_ref, lb1_ref,
                         wih2_ref, whh2_ref, lb2_ref,
                         w2a_ref, b2a_ref, w2b_ref, b2b_ref,
                         out_ref, *, d_model, n_emb, batch):
    f32 = jnp.float32
    d, E, B = d_model, n_emb, batch
    BT = B * SEQ                       # rows are time-major: row = t*B + b

    # ---- embedding gather (single one-hot matmul) + fc_block1, batched over t ----
    teams = teams_ref[...]                                      # (BT, 2) int32
    iota_e = lax.broadcasted_iota(jnp.int32, (BT, E), 1)
    oh_a = (iota_e == teams[:, 0:1]).astype(f32)                # (BT, E)
    oh_b = (iota_e == teams[:, 1:2]).astype(f32)
    oh = jnp.concatenate([oh_a, oh_b], axis=1)                  # (BT, 2E)
    ab = jnp.dot(oh, embblk_ref[...], preferred_element_type=f32)       # (BT, 2d)
    h1 = _gelu(jnp.dot(ab, w1a_ref[...], preferred_element_type=f32) + b1a_ref[...])
    sc = _gelu(jnp.dot(h1, w1b_ref[...], preferred_element_type=f32) + b1b_ref[...])

    # ---- Conv1d fused with LSTM layer-0 input projection: one matmul ----
    # wcih[:, t*4d:(t+1)*4d] = Wconv_block_t @ Wih0 ; bcih folds conv & lstm biases.
    xproj0 = (jnp.dot(xpad_ref[...], wcih_ref[...], preferred_element_type=f32)
              + bcih_ref[...])                                  # (B, SEQ*4d)

    def lstm_layer(xproj, whh, row_slab):
        # xproj: precomputed input projection (+bias) for all timesteps.
        #   row_slab=True : (BT, 4d), slice rows  t*B:(t+1)*B   (sublane aligned)
        #   row_slab=False: (B, SEQ*4d), slice lanes t*4d:(t+1)*4d (128-lane aligned)
        h = jnp.zeros((B, d), f32)
        c = jnp.zeros((B, d), f32)
        hs = []
        for t in range(SEQ):
            if row_slab:
                xp_t = xproj[t * B:(t + 1) * B, :]
            else:
                xp_t = xproj[:, t * 4 * d:(t + 1) * 4 * d]
            gates = xp_t + jnp.dot(h, whh, preferred_element_type=f32)   # (B, 4d)
            sg = jnp.asarray(jax.nn.sigmoid(gates))   # full-vreg EUP op
            th = jnp.tanh(gates)                      # full-vreg EUP op
            i_g = sg[:, 0:d]
            f_g = sg[:, d:2 * d]
            g_g = th[:, 2 * d:3 * d]
            o_g = sg[:, 3 * d:4 * d]
            c = f_g * c + i_g * g_g
            h = o_g * jnp.tanh(c)
            hs.append(h)
        return hs

    hs = lstm_layer(xproj0, whh0_ref[...], row_slab=False)
    for wih_ref, whh_ref, lb_ref in ((wih1_ref, whh1_ref, lb1_ref),
                                     (wih2_ref, whh2_ref, lb2_ref)):
        seq_rows = jnp.concatenate(hs, axis=0)                  # (BT, d) time-major
        xproj = (jnp.dot(seq_rows, wih_ref[...], preferred_element_type=f32)
                 + lb_ref[...])                                 # hoisted out of time loop
        hs = lstm_layer(xproj, whh_ref[...], row_slab=True)

    # ---- add, flatten (t, d) into lanes, fc_block2 with K = 5d ----
    y = jnp.concatenate([sc[t * B:(t + 1) * B, :] + hs[t] for t in range(SEQ)],
                        axis=1)                                 # (B, SEQ*d)
    h2 = _gelu(jnp.dot(y, w2a_ref[...], preferred_element_type=f32) + b2a_ref[...])
    out_ref[...] = _gelu(jnp.dot(h2, w2b_ref[...], preferred_element_type=f32)
                         + b2b_ref[...])


def past_analyser_forward(x, params, *, d_model, n_emb):
    """x: (B, 5, 20) float32; first 2 columns are team ids, last 18 are features."""
    B = x.shape[0]
    d = d_model

    # -- glue: time-major team ids, zero-padded conv input --
    teams = jnp.transpose(x[:, :, :2].astype(jnp.int32), (1, 0, 2)).reshape(SEQ * B, 2)
    xpad = jnp.pad(x[:, :, 2:], ((0, 0), (0, 0), (1, 1))).reshape(B, SEQ * PADL)

    # -- block-diagonal embedding table so one matmul yields [emb(A) | emb(B)] --
    emb = params["emb"]
    z = jnp.zeros((n_emb, d), jnp.float32)
    embblk = jnp.concatenate([jnp.concatenate([emb, z], axis=1),
                              jnp.concatenate([z, emb], axis=1)], axis=0)   # (2E, 2d)

    w1a = params["fc1_w1"].T
    b1a = params["fc1_b1"][None, :]
    w1b = params["fc1_w2"].T
    b1b = params["fc1_b2"][None, :]

    # -- dense conv matrix (100, 5*18), folded with LSTM layer-0 input projection --
    s_np = np.zeros((SEQ, KW, SEQ * PADL, FEAT), np.float32)
    for i in range(SEQ):
        for k in range(KW):
            for j in range(FEAT):
                s_np[i, k, i * PADL + j + k, j] = 1.0
    sel = jnp.asarray(s_np)
    wconv = jnp.einsum("oik,ikrj->roj", params["conv_w"], sel)    # (100, SEQ, FEAT)
    wih0 = params["lstm_wih0"].T                                  # (FEAT, 4d)
    wcih = jnp.einsum("rtf,fg->rtg", wconv, wih0).reshape(SEQ * PADL, SEQ * 4 * d)
    lb0 = params["lstm_bih0"] + params["lstm_bhh0"]
    bcih = (params["conv_b"][:, None] * jnp.sum(wih0, axis=0)[None, :]
            + lb0[None, :]).reshape(1, SEQ * 4 * d)

    whh0 = params["lstm_whh0"].T
    wih1 = params["lstm_wih1"].T
    whh1 = params["lstm_whh1"].T
    lb1 = (params["lstm_bih1"] + params["lstm_bhh1"])[None, :]
    wih2 = params["lstm_wih2"].T
    whh2 = params["lstm_whh2"].T
    lb2 = (params["lstm_bih2"] + params["lstm_bhh2"])[None, :]

    w2a = params["fc2_w1"].T
    b2a = params["fc2_b1"][None, :]
    w2b = params["fc2_w2"].T
    b2b = params["fc2_b2"][None, :]

    kern = functools.partial(past_analyser_kernel,
                             d_model=d, n_emb=n_emb, batch=B)
    vmem = pl.BlockSpec(memory_space=pltpu.MemorySpace.VMEM)
    args = (teams, xpad, embblk, w1a, b1a, w1b, b1b, wcih, bcih,
            whh0, wih1, whh1, lb1, wih2, whh2, lb2, w2a, b2a, w2b, b2b)
    # TODO(synk): if batch grows, add a batch grid axis with dimension_semantics=("parallel",)
    # (v7x 2-TC split) and size batch tiles against v7x's 64 MiB VMEM.
    return pl.pallas_call(
        kern,
        out_shape=jax.ShapeDtypeStruct((B, d), jnp.float32),
        in_specs=[vmem] * len(args),
        out_specs=pl.BlockSpec(memory_space=pltpu.MemorySpace.VMEM),
    )(*args)


def init_params(key, d, E):
    ks = jax.random.split(key, 24)

    def u(k, shape, fan_in):
        s = 1.0 / float(fan_in) ** 0.5
        return jax.random.uniform(k, shape, jnp.float32, -s, s)

    p = {}
    p["emb"] = jax.random.normal(ks[0], (E, d), jnp.float32) * 0.1
    # fc_block1: Linear(2d, 3d), Linear(3d, d)       (torch layout: (out, in))
    p["fc1_w1"] = u(ks[1], (3 * d, 2 * d), 2 * d)
    p["fc1_b1"] = u(ks[2], (3 * d,), 2 * d)
    p["fc1_w2"] = u(ks[3], (d, 3 * d), 3 * d)
    p["fc1_b2"] = u(ks[4], (d,), 3 * d)
    # Conv1d(5, 5, 3)
    p["conv_w"] = u(ks[5], (SEQ, SEQ, KW), SEQ * KW)
    p["conv_b"] = u(ks[6], (SEQ,), SEQ * KW)
    # LSTM(18, d, num_layers=3)
    in_sizes = [FEAT, d, d]
    for l in range(3):
        p[f"lstm_wih{l}"] = u(ks[7 + 4 * l], (4 * d, in_sizes[l]), d)
        p[f"lstm_whh{l}"] = u(ks[8 + 4 * l], (4 * d, d), d)
        p[f"lstm_bih{l}"] = u(ks[9 + 4 * l], (4 * d,), d)
        p[f"lstm_bhh{l}"] = u(ks[10 + 4 * l], (4 * d,), d)
    # fc_block2: Linear(5d, 5d), Linear(5d, d)
    p["fc2_w1"] = u(ks[19], (5 * d, 5 * d), 5 * d)
    p["fc2_b1"] = u(ks[20], (5 * d,), 5 * d)
    p["fc2_w2"] = u(ks[21], (d, 5 * d), 5 * d)
    p["fc2_b2"] = u(ks[22], (d,), 5 * d)
    return p


def reference_forward(x, params, d, E):
    """Plain-JAX reference mirroring the PyTorch forward (for verification)."""
    B = x.shape[0]
    gelu = lambda v: jax.nn.gelu(v, approximate=False)
    teams = x[:, :, :2].astype(jnp.int32)                          # (B,5,2)
    emb = jnp.take(params["emb"], teams, axis=0)                   # (B,5,2,d)
    flat = emb.reshape(B, SEQ, 2 * d)
    h1 = gelu(flat @ params["fc1_w1"].T + params["fc1_b1"])
    sc = gelu(h1 @ params["fc1_w2"].T + params["fc1_b2"])          # (B,5,d)
    xf = x[:, :, 2:]
    conv = lax.conv_general_dilated(xf, params["conv_w"], (1,), [(1, 1)],
                                    dimension_numbers=("NCH", "OIH", "NCH"))
    conv = conv + params["conv_b"][None, :, None]                  # (B,5,18)
    seq = [conv[:, t, :] for t in range(SEQ)]
    for l in range(3):
        wih, whh = params[f"lstm_wih{l}"], params[f"lstm_whh{l}"]
        b = params[f"lstm_bih{l}"] + params[f"lstm_bhh{l}"]
        h = jnp.zeros((B, d), jnp.float32)
        c = jnp.zeros((B, d), jnp.float32)
        new = []
        for t in range(SEQ):
            g = seq[t] @ wih.T + h @ whh.T + b
            i_g = jax.nn.sigmoid(g[:, :d])
            f_g = jax.nn.sigmoid(g[:, d:2 * d])
            g_g = jnp.tanh(g[:, 2 * d:3 * d])
            o_g = jax.nn.sigmoid(g[:, 3 * d:])
            c = f_g * c + i_g * g_g
            h = o_g * jnp.tanh(c)
            new.append(h)
        seq = new
    lstm_out = jnp.stack(seq, axis=1)                              # (B,5,d)
    y = (sc + lstm_out).reshape(B, SEQ * d)
    h2 = gelu(y @ params["fc2_w1"].T + params["fc2_b1"])
    return gelu(h2 @ params["fc2_w2"].T + params["fc2_b2"])


if __name__ == "__main__":
    B, d_model, n_emb = 8, 32, 32
    key = jax.random.PRNGKey(0)
    pkey, tkey, fkey = jax.random.split(key, 3)

    params = init_params(pkey, d_model, n_emb)
    team_ids = jax.random.randint(tkey, (B, SEQ, 2), 0, n_emb).astype(jnp.float32)
    feats = jax.random.normal(fkey, (B, SEQ, FEAT), jnp.float32)
    x = jnp.concatenate([team_ids, feats], axis=-1)                # (B, 5, 20)

    out = past_analyser_forward(x, params, d_model=d_model, n_emb=n_emb)
    out = jax.block_until_ready(out)

    ref = reference_forward(x, params, d_model, n_emb)
    assert out.shape == (B, d_model)
    np.testing.assert_allclose(np.asarray(out), np.asarray(ref),
                               atol=1e-2, rtol=1e-2)
    print("KERNEL_OK")
</pallas_src>

<mosaic_0001>
module attributes {stable_mosaic.version = 11 : i64} {
  func.func @past_analyser_kernel(%arg0: memref<40x2xi32, #tpu.memory_space<vmem>>, %arg1: memref<8x100xf32, #tpu.memory_space<vmem>>, %arg2: memref<64x64xf32, #tpu.memory_space<vmem>>, %arg3: memref<64x96xf32, #tpu.memory_space<vmem>>, %arg4: memref<1x96xf32, #tpu.memory_space<vmem>>, %arg5: memref<96x32xf32, #tpu.memory_space<vmem>>, %arg6: memref<1x32xf32, #tpu.memory_space<vmem>>, %arg7: memref<100x640xf32, #tpu.memory_space<vmem>>, %arg8: memref<1x640xf32, #tpu.memory_space<vmem>>, %arg9: memref<32x128xf32, #tpu.memory_space<vmem>>, %arg10: memref<32x128xf32, #tpu.memory_space<vmem>>, %arg11: memref<32x128xf32, #tpu.memory_space<vmem>>, %arg12: memref<1x128xf32, #tpu.memory_space<vmem>>, %arg13: memref<32x128xf32, #tpu.memory_space<vmem>>, %arg14: memref<32x128xf32, #tpu.memory_space<vmem>>, %arg15: memref<1x128xf32, #tpu.memory_space<vmem>>, %arg16: memref<160x160xf32, #tpu.memory_space<vmem>>, %arg17: memref<1x160xf32, #tpu.memory_space<vmem>>, %arg18: memref<160x32xf32, #tpu.memory_space<vmem>>, %arg19: memref<1x32xf32, #tpu.memory_space<vmem>>, %arg20: memref<8x32xf32, #tpu.memory_space<vmem>>) attributes {dimension_semantics = [], scalar_prefetch = 0 : i64, scratch_operands = 0 : i64, tpu.core_type = #tpu.core_type<tc>} {
    %c0 = arith.constant 0 : index
    %c0_0 = arith.constant 0 : index
    %0 = vector.load %arg0[%c0, %c0_0] : memref<40x2xi32, #tpu.memory_space<vmem>>, vector<40x2xi32>
    %1 = tpu.iota {dimensions = array<i32: 1>} : vector<40x32xi32>
    %2 = vector.extract_strided_slice %0 {offsets = [0, 0], sizes = [40, 1], strides = [1, 1]} : vector<40x2xi32> to vector<40x1xi32>
    %3 = vector.broadcast %2 : vector<40x1xi32> to vector<40x32xi32>
    %4 = arith.cmpi eq, %1, %3 : vector<40x32xi32>
    %5 = arith.extui %4 : vector<40x32xi1> to vector<40x32xi32>
    %6 = arith.sitofp %5 : vector<40x32xi32> to vector<40x32xf32>
    %7 = vector.extract_strided_slice %0 {offsets = [0, 1], sizes = [40, 1], strides = [1, 1]} : vector<40x2xi32> to vector<40x1xi32>
    %8 = vector.broadcast %7 : vector<40x1xi32> to vector<40x32xi32>
    %9 = arith.cmpi eq, %1, %8 : vector<40x32xi32>
    %10 = arith.extui %9 : vector<40x32xi1> to vector<40x32xi32>
    %11 = arith.sitofp %10 : vector<40x32xi32> to vector<40x32xf32>
    %12 = tpu.concatenate %6, %11 in 1 : vector<40x32xf32>, vector<40x32xf32> -> vector<40x64xf32>
    %c0_1 = arith.constant 0 : index
    %c0_2 = arith.constant 0 : index
    %13 = vector.load %arg2[%c0_1, %c0_2] : memref<64x64xf32, #tpu.memory_space<vmem>>, vector<64x64xf32>
    %cst = arith.constant dense<0.000000e+00> : vector<40x64xf32>
    %14 = tpu.matmul %12, %13, %cst {dimension_numbers = #tpu.dot_dimension_numbers<[1], [0], [0], [1], [0, 0, 1, 1], [], []>} : vector<40x64xf32>, vector<64x64xf32>, vector<40x64xf32> -> vector<40x64xf32>
    %c0_3 = arith.constant 0 : index
    %c0_4 = arith.constant 0 : index
    %15 = vector.load %arg3[%c0_3, %c0_4] : memref<64x96xf32, #tpu.memory_space<vmem>>, vector<64x96xf32>
    %cst_5 = arith.constant dense<0.000000e+00> : vector<40x96xf32>
    %16 = tpu.matmul %14, %15, %cst_5 {dimension_numbers = #tpu.dot_dimension_numbers<[1], [0], [0], [1], [0, 0, 1, 1], [], []>} : vector<40x64xf32>, vector<64x96xf32>, vector<40x96xf32> -> vector<40x96xf32>
    %c0_6 = arith.constant 0 : index
    %c0_7 = arith.constant 0 : index
    %17 = vector.load %arg4[%c0_6, %c0_7] : memref<1x96xf32, #tpu.memory_space<vmem>>, vector<1x96xf32>
    %18 = vector.broadcast %17 : vector<1x96xf32> to vector<40x96xf32>
    %19 = arith.addf %16, %18 : vector<40x96xf32>
    %cst_8 = arith.constant 5.000000e-01 : f32
    %20 = vector.broadcast %cst_8 : f32 to vector<40x96xf32>
    %21 = arith.mulf %20, %19 : vector<40x96xf32>
    %cst_9 = arith.constant 4.471500e-02 : f32
    %22 = vector.broadcast %cst_9 : f32 to vector<40x96xf32>
    %23 = arith.mulf %22, %19 : vector<40x96xf32>
    %24 = arith.mulf %23, %19 : vector<40x96xf32>
    %25 = arith.mulf %24, %19 : vector<40x96xf32>
    %26 = arith.addf %19, %25 : vector<40x96xf32>
    %cst_10 = arith.constant 0.797884583 : f32
    %27 = vector.broadcast %cst_10 : f32 to vector<40x96xf32>
    %28 = arith.mulf %27, %26 : vector<40x96xf32>
    %29 = math.tanh %28 : vector<40x96xf32>
    %cst_11 = arith.constant 1.000000e+00 : f32
    %30 = vector.broadcast %cst_11 : f32 to vector<40x96xf32>
    %31 = arith.addf %30, %29 : vector<40x96xf32>
    %32 = arith.mulf %21, %31 : vector<40x96xf32>
    %c0_12 = arith.constant 0 : index
    %c0_13 = arith.constant 0 : index
    %33 = vector.load %arg5[%c0_12, %c0_13] : memref<96x32xf32, #tpu.memory_space<vmem>>, vector<96x32xf32>
    %cst_14 = arith.constant dense<0.000000e+00> : vector<40x32xf32>
    %34 = tpu.matmul %32, %33, %cst_14 {dimension_numbers = #tpu.dot_dimension_numbers<[1], [0], [0], [1], [0, 0, 1, 1], [], []>} : vector<40x96xf32>, vector<96x32xf32>, vector<40x32xf32> -> vector<40x32xf32>
    %c0_15 = arith.constant 0 : index
    %c0_16 = arith.constant 0 : index
    %35 = vector.load %arg6[%c0_15, %c0_16] : memref<1x32xf32, #tpu.memory_space<vmem>>, vector<1x32xf32>
    %36 = vector.broadcast %35 : vector<1x32xf32> to vector<40x32xf32>
    %37 = arith.addf %34, %36 : vector<40x32xf32>
    %cst_17 = arith.constant 5.000000e-01 : f32
    %38 = vector.broadcast %cst_17 : f32 to vector<40x32xf32>
    %39 = arith.mulf %38, %37 : vector<40x32xf32>
    %cst_18 = arith.constant 4.471500e-02 : f32
    %40 = vector.broadcast %cst_18 : f32 to vector<40x32xf32>
    %41 = arith.mulf %40, %37 : vector<40x32xf32>
    %42 = arith.mulf %41, %37 : vector<40x32xf32>
    %43 = arith.mulf %42, %37 : vector<40x32xf32>
    %44 = arith.addf %37, %43 : vector<40x32xf32>
    %cst_19 = arith.constant 0.797884583 : f32
    %45 = vector.broadcast %cst_19 : f32 to vector<40x32xf32>
    %46 = arith.mulf %45, %44 : vector<40x32xf32>
    %47 = math.tanh %46 : vector<40x32xf32>
    %cst_20 = arith.constant 1.000000e+00 : f32
    %48 = vector.broadcast %cst_20 : f32 to vector<40x32xf32>
    %49 = arith.addf %48, %47 : vector<40x32xf32>
    %50 = arith.mulf %39, %49 : vector<40x32xf32>
    %c0_21 = arith.constant 0 : index
    %c0_22 = arith.constant 0 : index
    %51 = vector.load %arg1[%c0_21, %c0_22] : memref<8x100xf32, #tpu.memory_space<vmem>>, vector<8x100xf32>
    %c0_23 = arith.constant 0 : index
    %c0_24 = arith.constant 0 : index
    %52 = vector.load %arg7[%c0_23, %c0_24] : memref<100x640xf32, #tpu.memory_space<vmem>>, vector<100x640xf32>
    %cst_25 = arith.constant dense<0.000000e+00> : vector<8x640xf32>
    %53 = tpu.matmul %51, %52, %cst_25 {dimension_numbers = #tpu.dot_dimension_numbers<[1], [0], [0], [1], [0, 0, 1, 1], [], []>} : vector<8x100xf32>, vector<100x640xf32>, vector<8x640xf32> -> vector<8x640xf32>
    %c0_26 = arith.constant 0 : index
    %c0_27 = arith.constant 0 : index
    %54 = vector.load %arg8[%c0_26, %c0_27] : memref<1x640xf32, #tpu.memory_space<vmem>>, vector<1x640xf32>
    %55 = vector.broadcast %54 : vector<1x640xf32> to vector<8x640xf32>
    %56 = arith.addf %53, %55 : vector<8x640xf32>
    %c0_28 = arith.constant 0 : index
    %c0_29 = arith.constant 0 : index
    %57 = vector.load %arg9[%c0_28, %c0_29] : memref<32x128xf32, #tpu.memory_space<vmem>>, vector<32x128xf32>
    %cst_30 = arith.constant 0.000000e+00 : f32
    %58 = vector.broadcast %cst_30 : f32 to vector<8x32xf32>
    %cst_31 = arith.constant 0.000000e+00 : f32
    %59 = vector.broadcast %cst_31 : f32 to vector<8x32xf32>
    %60 = vector.extract_strided_slice %56 {offsets = [0, 0], sizes = [8, 128], strides = [1, 1]} : vector<8x640xf32> to vector<8x128xf32>
    %cst_32 = arith.constant dense<0.000000e+00> : vector<8x128xf32>
    %61 = tpu.matmul %58, %57, %cst_32 {dimension_numbers = #tpu.dot_dimension_numbers<[1], [0], [0], [1], [0, 0, 1, 1], [], []>} : vector<8x32xf32>, vector<32x128xf32>, vector<8x128xf32> -> vector<8x128xf32>
    %62 = arith.addf %60, %61 : vector<8x128xf32>
    %63 = arith.negf %62 : vector<8x128xf32>
    %64 = math.exp %63 : vector<8x128xf32>
    %cst_33 = arith.constant 1.000000e+00 : f32
    %65 = vector.broadcast %cst_33 : f32 to vector<8x128xf32>
    %66 = arith.addf %65, %64 : vector<8x128xf32>
    %67 = arith.divf %65, %66 : vector<8x128xf32>
    %68 = math.tanh %62 : vector<8x128xf32>
    %69 = vector.extract_strided_slice %67 {offsets = [0, 0], sizes = [8, 32], strides = [1, 1]} : vector<8x128xf32> to vector<8x32xf32>
    %70 = vector.extract_strided_slice %67 {offsets = [0, 32], sizes = [8, 32], strides = [1, 1]} : vector<8x128xf32> to vector<8x32xf32>
    %71 = vector.extract_strided_slice %68 {offsets = [0, 64], sizes = [8, 32], strides = [1, 1]} : vector<8x128xf32> to vector<8x32xf32>
    %72 = vector.extract_strided_slice %67 {offsets = [0, 96], sizes = [8, 32], strides = [1, 1]} : vector<8x128xf32> to vector<8x32xf32>
    %73 = arith.mulf %70, %59 : vector<8x32xf32>
    %74 = arith.mulf %69, %71 : vector<8x32xf32>
    %75 = arith.addf %73, %74 : vector<8x32xf32>
    %76 = math.tanh %75 : vector<8x32xf32>
    %77 = arith.mulf %72, %76 : vector<8x32xf32>
    %78 = vector.extract_strided_slice %56 {offsets = [0, 128], sizes = [8, 128], strides = [1, 1]} : vector<8x640xf32> to vector<8x128xf32>
    %cst_34 = arith.constant dense<0.000000e+00> : vector<8x128xf32>
    %79 = tpu.matmul %77, %57, %cst_34 {dimension_numbers = #tpu.dot_dimension_numbers<[1], [0], [0], [1], [0, 0, 1, 1], [], []>} : vector<8x32xf32>, vector<32x128xf32>, vector<8x128xf32> -> vector<8x128xf32>
    %80 = arith.addf %78, %79 : vector<8x128xf32>
    %81 = arith.negf %80 : vector<8x128xf32>
    %82 = math.exp %81 : vector<8x128xf32>
    %cst_35 = arith.constant 1.000000e+00 : f32
    %83 = vector.broadcast %cst_35 : f32 to vector<8x128xf32>
    %84 = arith.addf %83, %82 : vector<8x128xf32>
    %85 = arith.divf %83, %84 : vector<8x128xf32>
    %86 = math.tanh %80 : vector<8x128xf32>
    %87 = vector.extract_strided_slice %85 {offsets = [0, 0], sizes = [8, 32], strides = [1, 1]} : vector<8x128xf32> to vector<8x32xf32>
    %88 = vector.extract_strided_slice %85 {offsets = [0, 32], sizes = [8, 32], strides = [1, 1]} : vector<8x128xf32> to vector<8x32xf32>
    %89 = vector.extract_strided_slice %86 {offsets = [0, 64], sizes = [8, 32], strides = [1, 1]} : vector<8x128xf32> to vector<8x32xf32>
    %90 = vector.extract_strided_slice %85 {offsets = [0, 96], sizes = [8, 32], strides = [1, 1]} : vector<8x128xf32> to vector<8x32xf32>
    %91 = arith.mulf %88, %75 : vector<8x32xf32>
    %92 = arith.mulf %87, %89 : vector<8x32xf32>
    %93 = arith.addf %91, %92 : vector<8x32xf32>
    %94 = math.tanh %93 : vector<8x32xf32>
    %95 = arith.mulf %90, %94 : vector<8x32xf32>
    %96 = vector.extract_strided_slice %56 {offsets = [0, 256], sizes = [8, 128], strides = [1, 1]} : vector<8x640xf32> to vector<8x128xf32>
    %cst_36 = arith.constant dense<0.000000e+00> : vector<8x128xf32>
    %97 = tpu.matmul %95, %57, %cst_36 {dimension_numbers = #tpu.dot_dimension_numbers<[1], [0], [0], [1], [0, 0, 1, 1], [], []>} : vector<8x32xf32>, vector<32x128xf32>, vector<8x128xf32> -> vector<8x128xf32>
    %98 = arith.addf %96, %97 : vector<8x128xf32>
    %99 = arith.negf %98 : vector<8x128xf32>
    %100 = math.exp %99 : vector<8x128xf32>
    %cst_37 = arith.constant 1.000000e+00 : f32
    %101 = vector.broadcast %cst_37 : f32 to vector<8x128xf32>
    %102 = arith.addf %101, %100 : vector<8x128xf32>
    %103 = arith.divf %101, %102 : vector<8x128xf32>
    %104 = math.tanh %98 : vector<8x128xf32>
    %105 = vector.extract_strided_slice %103 {offsets = [0, 0], sizes = [8, 32], strides = [1, 1]} : vector<8x128xf32> to vector<8x32xf32>
    %106 = vector.extract_strided_slice %103 {offsets = [0, 32], sizes = [8, 32], strides = [1, 1]} : vector<8x128xf32> to vector<8x32xf32>
    %107 = vector.extract_strided_slice %104 {offsets = [0, 64], sizes = [8, 32], strides = [1, 1]} : vector<8x128xf32> to vector<8x32xf32>
    %108 = vector.extract_strided_slice %103 {offsets = [0, 96], sizes = [8, 32], strides = [1, 1]} : vector<8x128xf32> to vector<8x32xf32>
    %109 = arith.mulf %106, %93 : vector<8x32xf32>
    %110 = arith.mulf %105, %107 : vector<8x32xf32>
    %111 = arith.addf %109, %110 : vector<8x32xf32>
    %112 = math.tanh %111 : vector<8x32xf32>
    %113 = arith.mulf %108, %112 : vector<8x32xf32>
    %114 = vector.extract_strided_slice %56 {offsets = [0, 384], sizes = [8, 128], strides = [1, 1]} : vector<8x640xf32> to vector<8x128xf32>
    %cst_38 = arith.constant dense<0.000000e+00> : vector<8x128xf32>
    %115 = tpu.matmul %113, %57, %cst_38 {dimension_numbers = #tpu.dot_dimension_numbers<[1], [0], [0], [1], [0, 0, 1, 1], [], []>} : vector<8x32xf32>, vector<32x128xf32>, vector<8x128xf32> -> vector<8x128xf32>
    %116 = arith.addf %114, %115 : vector<8x128xf32>
    %117 = arith.negf %116 : vector<8x128xf32>
    %118 = math.exp %117 : vector<8x128xf32>
    %cst_39 = arith.constant 1.000000e+00 : f32
    %119 = vector.broadcast %cst_39 : f32 to vector<8x128xf32>
    %120 = arith.addf %119, %118 : vector<8x128xf32>
    %121 = arith.divf %119, %120 : vector<8x128xf32>
    %122 = math.tanh %116 : vector<8x128xf32>
    %123 = vector.extract_strided_slice %121 {offsets = [0, 0], sizes = [8, 32], strides = [1, 1]} : vector<8x128xf32> to vector<8x32xf32>
    %124 = vector.extract_strided_slice %121 {offsets = [0, 32], sizes = [8, 32], strides = [1, 1]} : vector<8x128xf32> to vector<8x32xf32>
    %125 = vector.extract_strided_slice %122 {offsets = [0, 64], sizes = [8, 32], strides = [1, 1]} : vector<8x128xf32> to vector<8x32xf32>
    %126 = vector.extract_strided_slice %121 {offsets = [0, 96], sizes = [8, 32], strides = [1, 1]} : vector<8x128xf32> to vector<8x32xf32>
    %127 = arith.mulf %124, %111 : vector<8x32xf32>
    %128 = arith.mulf %123, %125 : vector<8x32xf32>
    %129 = arith.addf %127, %128 : vector<8x32xf32>
    %130 = math.tanh %129 : vector<8x32xf32>
    %131 = arith.mulf %126, %130 : vector<8x32xf32>
    %132 = vector.extract_strided_slice %56 {offsets = [0, 512], sizes = [8, 128], strides = [1, 1]} : vector<8x640xf32> to vector<8x128xf32>
    %cst_40 = arith.constant dense<0.000000e+00> : vector<8x128xf32>
    %133 = tpu.matmul %131, %57, %cst_40 {dimension_numbers = #tpu.dot_dimension_numbers<[1], [0], [0], [1], [0, 0, 1, 1], [], []>} : vector<8x32xf32>, vector<32x128xf32>, vector<8x128xf32> -> vector<8x128xf32>
    %134 = arith.addf %132, %133 : vector<8x128xf32>
    %135 = arith.negf %134 : vector<8x128xf32>
    %136 = math.exp %135 : vector<8x128xf32>
    %cst_41 = arith.constant 1.000000e+00 : f32
    %137 = vector.broadcast %cst_41 : f32 to vector<8x128xf32>
    %138 = arith.addf %137, %136 : vector<8x128xf32>
    %139 = arith.divf %137, %138 : vector<8x128xf32>
    %140 = math.tanh %134 : vector<8x128xf32>
    %141 = vector.extract_strided_slice %139 {offsets = [0, 0], sizes = [8, 32], strides = [1, 1]} : vector<8x128xf32> to vector<8x32xf32>
    %142 = vector.extract_strided_slice %139 {offsets = [0, 32], sizes = [8, 32], strides = [1, 1]} : vector<8x128xf32> to vector<8x32xf32>
    %143 = vector.extract_strided_slice %140 {offsets = [0, 64], sizes = [8, 32], strides = [1, 1]} : vector<8x128xf32> to vector<8x32xf32>
    %144 = vector.extract_strided_slice %139 {offsets = [0, 96], sizes = [8, 32], strides = [1, 1]} : vector<8x128xf32> to vector<8x32xf32>
    %145 = arith.mulf %142, %129 : vector<8x32xf32>
    %146 = arith.mulf %141, %143 : vector<8x32xf32>
    %147 = arith.addf %145, %146 : vector<8x32xf32>
    %148 = math.tanh %147 : vector<8x32xf32>
    %149 = arith.mulf %144, %148 : vector<8x32xf32>
    %150 = tpu.concatenate %77, %95, %113, %131, %149 in 0 : vector<8x32xf32>, vector<8x32xf32>, vector<8x32xf32>, vector<8x32xf32>, vector<8x32xf32> -> vector<40x32xf32>
    %c0_42 = arith.constant 0 : index
    %c0_43 = arith.constant 0 : index
    %151 = vector.load %arg10[%c0_42, %c0_43] : memref<32x128xf32, #tpu.memory_space<vmem>>, vector<32x128xf32>
    %cst_44 = arith.constant dense<0.000000e+00> : vector<40x128xf32>
    %152 = tpu.matmul %150, %151, %cst_44 {dimension_numbers = #tpu.dot_dimension_numbers<[1], [0], [0], [1], [0, 0, 1, 1], [], []>} : vector<40x32xf32>, vector<32x128xf32>, vector<40x128xf32> -> vector<40x128xf32>
    %c0_45 = arith.constant 0 : index
    %c0_46 = arith.constant 0 : index
    %153 = vector.load %arg12[%c0_45, %c0_46] : memref<1x128xf32, #tpu.memory_space<vmem>>, vector<1x128xf32>
    %154 = vector.broadcast %153 : vector<1x128xf32> to vector<40x128xf32>
    %155 = arith.addf %152, %154 : vector<40x128xf32>
    %c0_47 = arith.constant 0 : index
    %c0_48 = arith.constant 0 : index
    %156 = vector.load %arg11[%c0_47, %c0_48] : memref<32x128xf32, #tpu.memory_space<vmem>>, vector<32x128xf32>
    %cst_49 = arith.constant 0.000000e+00 : f32
    %157 = vector.broadcast %cst_49 : f32 to vector<8x32xf32>
    %cst_50 = arith.constant 0.000000e+00 : f32
    %158 = vector.broadcast %cst_50 : f32 to vector<8x32xf32>
    %159 = vector.extract_strided_slice %155 {offsets = [0, 0], sizes = [8, 128], strides = [1, 1]} : vector<40x128xf32> to vector<8x128xf32>
    %cst_51 = arith.constant dense<0.000000e+00> : vector<8x128xf32>
    %160 = tpu.matmul %157, %156, %cst_51 {dimension_numbers = #tpu.dot_dimension_numbers<[1], [0], [0], [1], [0, 0, 1, 1], [], []>} : vector<8x32xf32>, vector<32x128xf32>, vector<8x128xf32> -> vector<8x128xf32>
    %161 = arith.addf %159, %160 : vector<8x128xf32>
    %162 = arith.negf %161 : vector<8x128xf32>
    %163 = math.exp %162 : vector<8x128xf32>
    %cst_52 = arith.constant 1.000000e+00 : f32
    %164 = vector.broadcast %cst_52 : f32 to vector<8x128xf32>
    %165 = arith.addf %164, %163 : vector<8x128xf32>
    %166 = arith.divf %164, %165 : vector<8x128xf32>
    %167 = math.tanh %161 : vector<8x128xf32>
    %168 = vector.extract_strided_slice %166 {offsets = [0, 0], sizes = [8, 32], strides = [1, 1]} : vector<8x128xf32> to vector<8x32xf32>
    %169 = vector.extract_strided_slice %166 {offsets = [0, 32], sizes = [8, 32], strides = [1, 1]} : vector<8x128xf32> to vector<8x32xf32>
    %170 = vector.extract_strided_slice %167 {offsets = [0, 64], sizes = [8, 32], strides = [1, 1]} : vector<8x128xf32> to vector<8x32xf32>
    %171 = vector.extract_strided_slice %166 {offsets = [0, 96], sizes = [8, 32], strides = [1, 1]} : vector<8x128xf32> to vector<8x32xf32>
    %172 = arith.mulf %169, %158 : vector<8x32xf32>
    %173 = arith.mulf %168, %170 : vector<8x32xf32>
    %174 = arith.addf %172, %173 : vector<8x32xf32>
    %175 = math.tanh %174 : vector<8x32xf32>
    %176 = arith.mulf %171, %175 : vector<8x32xf32>
    %177 = vector.extract_strided_slice %155 {offsets = [8, 0], sizes = [8, 128], strides = [1, 1]} : vector<40x128xf32> to vector<8x128xf32>
    %cst_53 = arith.constant dense<0.000000e+00> : vector<8x128xf32>
    %178 = tpu.matmul %176, %156, %cst_53 {dimension_numbers = #tpu.dot_dimension_numbers<[1], [0], [0], [1], [0, 0, 1, 1], [], []>} : vector<8x32xf32>, vector<32x128xf32>, vector<8x128xf32> -> vector<8x128xf32>
    %179 = arith.addf %177, %178 : vector<8x128xf32>
    %180 = arith.negf %179 : vector<8x128xf32>
    %181 = math.exp %180 : vector<8x128xf32>
    %cst_54 = arith.constant 1.000000e+00 : f32
    %182 = vector.broadcast %cst_54 : f32 to vector<8x128xf32>
    %183 = arith.addf %182, %181 : vector<8x128xf32>
    %184 = arith.divf %182, %183 : vector<8x128xf32>
    %185 = math.tanh %179 : vector<8x128xf32>
    %186 = vector.extract_strided_slice %184 {offsets = [0, 0], sizes = [8, 32], strides = [1, 1]} : vector<8x128xf32> to vector<8x32xf32>
    %187 = vector.extract_strided_slice %184 {offsets = [0, 32], sizes = [8, 32], strides = [1, 1]} : vector<8x128xf32> to vector<8x32xf32>
    %188 = vector.extract_strided_slice %185 {offsets = [0, 64], sizes = [8, 32], strides = [1, 1]} : vector<8x128xf32> to vector<8x32xf32>
    %189 = vector.extract_strided_slice %184 {offsets = [0, 96], sizes = [8, 32], strides = [1, 1]} : vector<8x128xf32> to vector<8x32xf32>
    %190 = arith.mulf %187, %174 : vector<8x32xf32>
    %191 = arith.mulf %186, %188 : vector<8x32xf32>
    %192 = arith.addf %190, %191 : vector<8x32xf32>
    %193 = math.tanh %192 : vector<8x32xf32>
    %194 = arith.mulf %189, %193 : vector<8x32xf32>
    %195 = vector.extract_strided_slice %155 {offsets = [16, 0], sizes = [8, 128], strides = [1, 1]} : vector<40x128xf32> to vector<8x128xf32>
    %cst_55 = arith.constant dense<0.000000e+00> : vector<8x128xf32>
    %196 = tpu.matmul %194, %156, %cst_55 {dimension_numbers = #tpu.dot_dimension_numbers<[1], [0], [0], [1], [0, 0, 1, 1], [], []>} : vector<8x32xf32>, vector<32x128xf32>, vector<8x128xf32> -> vector<8x128xf32>
    %197 = arith.addf %195, %196 : vector<8x128xf32>
    %198 = arith.negf %197 : vector<8x128xf32>
    %199 = math.exp %198 : vector<8x128xf32>
    %cst_56 = arith.constant 1.000000e+00 : f32
    %200 = vector.broadcast %cst_56 : f32 to vector<8x128xf32>
    %201 = arith.addf %200, %199 : vector<8x128xf32>
    %202 = arith.divf %200, %201 : vector<8x128xf32>
    %203 = math.tanh %197 : vector<8x128xf32>
    %204 = vector.extract_strided_slice %202 {offsets = [0, 0], sizes = [8, 32], strides = [1, 1]} : vector<8x128xf32> to vector<8x32xf32>
    %205 = vector.extract_strided_slice %202 {offsets = [0, 32], sizes = [8, 32], strides = [1, 1]} : vector<8x128xf32> to vector<8x32xf32>
    %206 = vector.extract_strided_slice %203 {offsets = [0, 64], sizes = [8, 32], strides = [1, 1]} : vector<8x128xf32> to vector<8x32xf32>
    %207 = vector.extract_strided_slice %202 {offsets = [0, 96], sizes = [8, 32], strides = [1, 1]} : vector<8x128xf32> to vector<8x32xf32>
    %208 = arith.mulf %205, %192 : vector<8x32xf32>
    %209 = arith.mulf %204, %206 : vector<8x32xf32>
    %210 = arith.addf %208, %209 : vector<8x32xf32>
    %211 = math.tanh %210 : vector<8x32xf32>
    %212 = arith.mulf %207, %211 : vector<8x32xf32>
    %213 = vector.extract_strided_slice %155 {offsets = [24, 0], sizes = [8, 128], strides = [1, 1]} : vector<40x128xf32> to vector<8x128xf32>
    %cst_57 = arith.constant dense<0.000000e+00> : vector<8x128xf32>
    %214 = tpu.matmul %212, %156, %cst_57 {dimension_numbers = #tpu.dot_dimension_numbers<[1], [0], [0], [1], [0, 0, 1, 1], [], []>} : vector<8x32xf32>, vector<32x128xf32>, vector<8x128xf32> -> vector<8x128xf32>
    %215 = arith.addf %213, %214 : vector<8x128xf32>
    %216 = arith.negf %215 : vector<8x128xf32>
    %217 = math.exp %216 : vector<8x128xf32>
    %cst_58 = arith.constant 1.000000e+00 : f32
    %218 = vector.broadcast %cst_58 : f32 to vector<8x128xf32>
    %219 = arith.addf %218, %217 : vector<8x128xf32>
    %220 = arith.divf %218, %219 : vector<8x128xf32>
    %221 = math.tanh %215 : vector<8x128xf32>
    %222 = vector.extract_strided_slice %220 {offsets = [0, 0], sizes = [8, 32], strides = [1, 1]} : vector<8x128xf32> to vector<8x32xf32>
    %223 = vector.extract_strided_slice %220 {offsets = [0, 32], sizes = [8, 32], strides = [1, 1]} : vector<8x128xf32> to vector<8x32xf32>
    %224 = vector.extract_strided_slice %221 {offsets = [0, 64], sizes = [8, 32], strides = [1, 1]} : vector<8x128xf32> to vector<8x32xf32>
    %225 = vector.extract_strided_slice %220 {offsets = [0, 96], sizes = [8, 32], strides = [1, 1]} : vector<8x128xf32> to vector<8x32xf32>
    %226 = arith.mulf %223, %210 : vector<8x32xf32>
    %227 = arith.mulf %222, %224 : vector<8x32xf32>
    %228 = arith.addf %226, %227 : vector<8x32xf32>
    %229 = math.tanh %228 : vector<8x32xf32>
    %230 = arith.mulf %225, %229 : vector<8x32xf32>
    %231 = vector.extract_strided_slice %155 {offsets = [32, 0], sizes = [8, 128], strides = [1, 1]} : vector<40x128xf32> to vector<8x128xf32>
    %cst_59 = arith.constant dense<0.000000e+00> : vector<8x128xf32>
    %232 = tpu.matmul %230, %156, %cst_59 {dimension_numbers = #tpu.dot_dimension_numbers<[1], [0], [0], [1], [0, 0, 1, 1], [], []>} : vector<8x32xf32>, vector<32x128xf32>, vector<8x128xf32> -> vector<8x128xf32>
    %233 = arith.addf %231, %232 : vector<8x128xf32>
    %234 = arith.negf %233 : vector<8x128xf32>
    %235 = math.exp %234 : vector<8x128xf32>
    %cst_60 = arith.constant 1.000000e+00 : f32
    %236 = vector.broadcast %cst_60 : f32 to vector<8x128xf32>
    %237 = arith.addf %236, %235 : vector<8x128xf32>
    %238 = arith.divf %236, %237 : vector<8x128xf32>
    %239 = math.tanh %233 : vector<8x128xf32>
    %240 = vector.extract_strided_slice %238 {offsets = [0, 0], sizes = [8, 32], strides = [1, 1]} : vector<8x128xf32> to vector<8x32xf32>
    %241 = vector.extract_strided_slice %238 {offsets = [0, 32], sizes = [8, 32], strides = [1, 1]} : vector<8x128xf32> to vector<8x32xf32>
    %242 = vector.extract_strided_slice %239 {offsets = [0, 64], sizes = [8, 32], strides = [1, 1]} : vector<8x128xf32> to vector<8x32xf32>
    %243 = vector.extract_strided_slice %238 {offsets = [0, 96], sizes = [8, 32], strides = [1, 1]} : vector<8x128xf32> to vector<8x32xf32>
    %244 = arith.mulf %241, %228 : vector<8x32xf32>
    %245 = arith.mulf %240, %242 : vector<8x32xf32>
    %246 = arith.addf %244, %245 : vector<8x32xf32>
    %247 = math.tanh %246 : vector<8x32xf32>
    %248 = arith.mulf %243, %247 : vector<8x32xf32>
    %249 = tpu.concatenate %176, %194, %212, %230, %248 in 0 : vector<8x32xf32>, vector<8x32xf32>, vector<8x32xf32>, vector<8x32xf32>, vector<8x32xf32> -> vector<40x32xf32>
    %c0_61 = arith.constant 0 : index
    %c0_62 = arith.constant 0 : index
    %250 = vector.load %arg13[%c0_61, %c0_62] : memref<32x128xf32, #tpu.memory_space<vmem>>, vector<32x128xf32>
    %cst_63 = arith.constant dense<0.000000e+00> : vector<40x128xf32>
    %251 = tpu.matmul %249, %250, %cst_63 {dimension_numbers = #tpu.dot_dimension_numbers<[1], [0], [0], [1], [0, 0, 1, 1], [], []>} : vector<40x32xf32>, vector<32x128xf32>, vector<40x128xf32> -> vector<40x128xf32>
    %c0_64 = arith.constant 0 : index
    %c0_65 = arith.constant 0 : index
    %252 = vector.load %arg15[%c0_64, %c0_65] : memref<1x128xf32, #tpu.memory_space<vmem>>, vector<1x128xf32>
    %253 = vector.broadcast %252 : vector<1x128xf32> to vector<40x128xf32>
    %254 = arith.addf %251, %253 : vector<40x128xf32>
    %c0_66 = arith.constant 0 : index
    %c0_67 = arith.constant 0 : index
    %255 = vector.load %arg14[%c0_66, %c0_67] : memref<32x128xf32, #tpu.memory_space<vmem>>, vector<32x128xf32>
    %cst_68 = arith.constant 0.000000e+00 : f32
    %256 = vector.broadcast %cst_68 : f32 to vector<8x32xf32>
    %cst_69 = arith.constant 0.000000e+00 : f32
    %257 = vector.broadcast %cst_69 : f32 to vector<8x32xf32>
    %258 = vector.extract_strided_slice %254 {offsets = [0, 0], sizes = [8, 128], strides = [1, 1]} : vector<40x128xf32> to vector<8x128xf32>
    %cst_70 = arith.constant dense<0.000000e+00> : vector<8x128xf32>
    %259 = tpu.matmul %256, %255, %cst_70 {dimension_numbers = #tpu.dot_dimension_numbers<[1], [0], [0], [1], [0, 0, 1, 1], [], []>} : vector<8x32xf32>, vector<32x128xf32>, vector<8x128xf32> -> vector<8x128xf32>
    %260 = arith.addf %258, %259 : vector<8x128xf32>
    %261 = arith.negf %260 : vector<8x128xf32>
    %262 = math.exp %261 : vector<8x128xf32>
    %cst_71 = arith.constant 1.000000e+00 : f32
    %263 = vector.broadcast %cst_71 : f32 to vector<8x128xf32>
    %264 = arith.addf %263, %262 : vector<8x128xf32>
    %265 = arith.divf %263, %264 : vector<8x128xf32>
    %266 = math.tanh %260 : vector<8x128xf32>
    %267 = vector.extract_strided_slice %265 {offsets = [0, 0], sizes = [8, 32], strides = [1, 1]} : vector<8x128xf32> to vector<8x32xf32>
    %268 = vector.extract_strided_slice %265 {offsets = [0, 32], sizes = [8, 32], strides = [1, 1]} : vector<8x128xf32> to vector<8x32xf32>
    %269 = vector.extract_strided_slice %266 {offsets = [0, 64], sizes = [8, 32], strides = [1, 1]} : vector<8x128xf32> to vector<8x32xf32>
    %270 = vector.extract_strided_slice %265 {offsets = [0, 96], sizes = [8, 32], strides = [1, 1]} : vector<8x128xf32> to vector<8x32xf32>
    %271 = arith.mulf %268, %257 : vector<8x32xf32>
    %272 = arith.mulf %267, %269 : vector<8x32xf32>
    %273 = arith.addf %271, %272 : vector<8x32xf32>
    %274 = math.tanh %273 : vector<8x32xf32>
    %275 = arith.mulf %270, %274 : vector<8x32xf32>
    %276 = vector.extract_strided_slice %254 {offsets = [8, 0], sizes = [8, 128], strides = [1, 1]} : vector<40x128xf32> to vector<8x128xf32>
    %cst_72 = arith.constant dense<0.000000e+00> : vector<8x128xf32>
    %277 = tpu.matmul %275, %255, %cst_72 {dimension_numbers = #tpu.dot_dimension_numbers<[1], [0], [0], [1], [0, 0, 1, 1], [], []>} : vector<8x32xf32>, vector<32x128xf32>, vector<8x128xf32> -> vector<8x128xf32>
    %278 = arith.addf %276, %277 : vector<8x128xf32>
    %279 = arith.negf %278 : vector<8x128xf32>
    %280 = math.exp %279 : vector<8x128xf32>
    %cst_73 = arith.constant 1.000000e+00 : f32
    %281 = vector.broadcast %cst_73 : f32 to vector<8x128xf32>
    %282 = arith.addf %281, %280 : vector<8x128xf32>
    %283 = arith.divf %281, %282 : vector<8x128xf32>
    %284 = math.tanh %278 : vector<8x128xf32>
    %285 = vector.extract_strided_slice %283 {offsets = [0, 0], sizes = [8, 32], strides = [1, 1]} : vector<8x128xf32> to vector<8x32xf32>
    %286 = vector.extract_strided_slice %283 {offsets = [0, 32], sizes = [8, 32], strides = [1, 1]} : vector<8x128xf32> to vector<8x32xf32>
    %287 = vector.extract_strided_slice %284 {offsets = [0, 64], sizes = [8, 32], strides = [1, 1]} : vector<8x128xf32> to vector<8x32xf32>
    %288 = vector.extract_strided_slice %283 {offsets = [0, 96], sizes = [8, 32], strides = [1, 1]} : vector<8x128xf32> to vector<8x32xf32>
    %289 = arith.mulf %286, %273 : vector<8x32xf32>
    %290 = arith.mulf %285, %287 : vector<8x32xf32>
    %291 = arith.addf %289, %290 : vector<8x32xf32>
    %292 = math.tanh %291 : vector<8x32xf32>
    %293 = arith.mulf %288, %292 : vector<8x32xf32>
    %294 = vector.extract_strided_slice %254 {offsets = [16, 0], sizes = [8, 128], strides = [1, 1]} : vector<40x128xf32> to vector<8x128xf32>
    %cst_74 = arith.constant dense<0.000000e+00> : vector<8x128xf32>
    %295 = tpu.matmul %293, %255, %cst_74 {dimension_numbers = #tpu.dot_dimension_numbers<[1], [0], [0], [1], [0, 0, 1, 1], [], []>} : vector<8x32xf32>, vector<32x128xf32>, vector<8x128xf32> -> vector<8x128xf32>
    %296 = arith.addf %294, %295 : vector<8x128xf32>
    %297 = arith.negf %296 : vector<8x128xf32>
    %298 = math.exp %297 : vector<8x128xf32>
    %cst_75 = arith.constant 1.000000e+00 : f32
    %299 = vector.broadcast %cst_75 : f32 to vector<8x128xf32>
    %300 = arith.addf %299, %298 : vector<8x128xf32>
    %301 = arith.divf %299, %300 : vector<8x128xf32>
    %302 = math.tanh %296 : vector<8x128xf32>
    %303 = vector.extract_strided_slice %301 {offsets = [0, 0], sizes = [8, 32], strides = [1, 1]} : vector<8x128xf32> to vector<8x32xf32>
    %304 = vector.extract_strided_slice %301 {offsets = [0, 32], sizes = [8, 32], strides = [1, 1]} : vector<8x128xf32> to vector<8x32xf32>
    %305 = vector.extract_strided_slice %302 {offsets = [0, 64], sizes = [8, 32], strides = [1, 1]} : vector<8x128xf32> to vector<8x32xf32>
    %306 = vector.extract_strided_slice %301 {offsets = [0, 96], sizes = [8, 32], strides = [1, 1]} : vector<8x128xf32> to vector<8x32xf32>
    %307 = arith.mulf %304, %291 : vector<8x32xf32>
    %308 = arith.mulf %303, %305 : vector<8x32xf32>
    %309 = arith.addf %307, %308 : vector<8x32xf32>
    %310 = math.tanh %309 : vector<8x32xf32>
    %311 = arith.mulf %306, %310 : vector<8x32xf32>
    %312 = vector.extract_strided_slice %254 {offsets = [24, 0], sizes = [8, 128], strides = [1, 1]} : vector<40x128xf32> to vector<8x128xf32>
    %cst_76 = arith.constant dense<0.000000e+00> : vector<8x128xf32>
    %313 = tpu.matmul %311, %255, %cst_76 {dimension_numbers = #tpu.dot_dimension_numbers<[1], [0], [0], [1], [0, 0, 1, 1], [], []>} : vector<8x32xf32>, vector<32x128xf32>, vector<8x128xf32> -> vector<8x128xf32>
    %314 = arith.addf %312, %313 : vector<8x128xf32>
    %315 = arith.negf %314 : vector<8x128xf32>
    %316 = math.exp %315 : vector<8x128xf32>
    %cst_77 = arith.constant 1.000000e+00 : f32
    %317 = vector.broadcast %cst_77 : f32 to vector<8x128xf32>
    %318 = arith.addf %317, %316 : vector<8x128xf32>
    %319 = arith.divf %317, %318 : vector<8x128xf32>
    %320 = math.tanh %314 : vector<8x128xf32>
    %321 = vector.extract_strided_slice %319 {offsets = [0, 0], sizes = [8, 32], strides = [1, 1]} : vector<8x128xf32> to vector<8x32xf32>
    %322 = vector.extract_strided_slice %319 {offsets = [0, 32], sizes = [8, 32], strides = [1, 1]} : vector<8x128xf32> to vector<8x32xf32>
    %323 = vector.extract_strided_slice %320 {offsets = [0, 64], sizes = [8, 32], strides = [1, 1]} : vector<8x128xf32> to vector<8x32xf32>
    %324 = vector.extract_strided_slice %319 {offsets = [0, 96], sizes = [8, 32], strides = [1, 1]} : vector<8x128xf32> to vector<8x32xf32>
    %325 = arith.mulf %322, %309 : vector<8x32xf32>
    %326 = arith.mulf %321, %323 : vector<8x32xf32>
    %327 = arith.addf %325, %326 : vector<8x32xf32>
    %328 = math.tanh %327 : vector<8x32xf32>
    %329 = arith.mulf %324, %328 : vector<8x32xf32>
    %330 = vector.extract_strided_slice %254 {offsets = [32, 0], sizes = [8, 128], strides = [1, 1]} : vector<40x128xf32> to vector<8x128xf32>
    %cst_78 = arith.constant dense<0.000000e+00> : vector<8x128xf32>
    %331 = tpu.matmul %329, %255, %cst_78 {dimension_numbers = #tpu.dot_dimension_numbers<[1], [0], [0], [1], [0, 0, 1, 1], [], []>} : vector<8x32xf32>, vector<32x128xf32>, vector<8x128xf32> -> vector<8x128xf32>
    %332 = arith.addf %330, %331 : vector<8x128xf32>
    %333 = arith.negf %332 : vector<8x128xf32>
    %334 = math.exp %333 : vector<8x128xf32>
    %cst_79 = arith.constant 1.000000e+00 : f32
    %335 = vector.broadcast %cst_79 : f32 to vector<8x128xf32>
    %336 = arith.addf %335, %334 : vector<8x128xf32>
    %337 = arith.divf %335, %336 : vector<8x128xf32>
    %338 = math.tanh %332 : vector<8x128xf32>
    %339 = vector.extract_strided_slice %337 {offsets = [0, 0], sizes = [8, 32], strides = [1, 1]} : vector<8x128xf32> to vector<8x32xf32>
    %340 = vector.extract_strided_slice %337 {offsets = [0, 32], sizes = [8, 32], strides = [1, 1]} : vector<8x128xf32> to vector<8x32xf32>
    %341 = vector.extract_strided_slice %338 {offsets = [0, 64], sizes = [8, 32], strides = [1, 1]} : vector<8x128xf32> to vector<8x32xf32>
    %342 = vector.extract_strided_slice %337 {offsets = [0, 96], sizes = [8, 32], strides = [1, 1]} : vector<8x128xf32> to vector<8x32xf32>
    %343 = arith.mulf %340, %327 : vector<8x32xf32>
    %344 = arith.mulf %339, %341 : vector<8x32xf32>
    %345 = arith.addf %343, %344 : vector<8x32xf32>
    %346 = math.tanh %345 : vector<8x32xf32>
    %347 = arith.mulf %342, %346 : vector<8x32xf32>
    %348 = vector.extract_strided_slice %50 {offsets = [0, 0], sizes = [8, 32], strides = [1, 1]} : vector<40x32xf32> to vector<8x32xf32>
    %349 = arith.addf %348, %275 : vector<8x32xf32>
    %350 = vector.extract_strided_slice %50 {offsets = [8, 0], sizes = [8, 32], strides = [1, 1]} : vector<40x32xf32> to vector<8x32xf32>
    %351 = arith.addf %350, %293 : vector<8x32xf32>
    %352 = vector.extract_strided_slice %50 {offsets = [16, 0], sizes = [8, 32], strides = [1, 1]} : vector<40x32xf32> to vector<8x32xf32>
    %353 = arith.addf %352, %311 : vector<8x32xf32>
    %354 = vector.extract_strided_slice %50 {offsets = [24, 0], sizes = [8, 32], strides = [1, 1]} : vector<40x32xf32> to vector<8x32xf32>
    %355 = arith.addf %354, %329 : vector<8x32xf32>
    %356 = vector.extract_strided_slice %50 {offsets = [32, 0], sizes = [8, 32], strides = [1, 1]} : vector<40x32xf32> to vector<8x32xf32>
    %357 = arith.addf %356, %347 : vector<8x32xf32>
    %358 = tpu.concatenate %349, %351, %353, %355, %357 in 1 : vector<8x32xf32>, vector<8x32xf32>, vector<8x32xf32>, vector<8x32xf32>, vector<8x32xf32> -> vector<8x160xf32>
    %c0_80 = arith.constant 0 : index
    %c0_81 = arith.constant 0 : index
    %359 = vector.load %arg16[%c0_80, %c0_81] : memref<160x160xf32, #tpu.memory_space<vmem>>, vector<160x160xf32>
    %cst_82 = arith.constant dense<0.000000e+00> : vector<8x160xf32>
    %360 = tpu.matmul %358, %359, %cst_82 {dimension_numbers = #tpu.dot_dimension_numbers<[1], [0], [0], [1], [0, 0, 1, 1], [], []>} : vector<8x160xf32>, vector<160x160xf32>, vector<8x160xf32> -> vector<8x160xf32>
    %c0_83 = arith.constant 0 : index
    %c0_84 = arith.constant 0 : index
    %361 = vector.load %arg17[%c0_83, %c0_84] : memref<1x160xf32, #tpu.memory_space<vmem>>, vector<1x160xf32>
    %362 = vector.broadcast %361 : vector<1x160xf32> to vector<8x160xf32>
    %363 = arith.addf %360, %362 : vector<8x160xf32>
    %cst_85 = arith.constant 5.000000e-01 : f32
    %364 = vector.broadcast %cst_85 : f32 to vector<8x160xf32>
    %365 = arith.mulf %364, %363 : vector<8x160xf32>
    %cst_86 = arith.constant 4.471500e-02 : f32
    %366 = vector.broadcast %cst_86 : f32 to vector<8x160xf32>
    %367 = arith.mulf %366, %363 : vector<8x160xf32>
    %368 = arith.mulf %367, %363 : vector<8x160xf32>
    %369 = arith.mulf %368, %363 : vector<8x160xf32>
    %370 = arith.addf %363, %369 : vector<8x160xf32>
    %cst_87 = arith.constant 0.797884583 : f32
    %371 = vector.broadcast %cst_87 : f32 to vector<8x160xf32>
    %372 = arith.mulf %371, %370 : vector<8x160xf32>
    %373 = math.tanh %372 : vector<8x160xf32>
    %cst_88 = arith.constant 1.000000e+00 : f32
    %374 = vector.broadcast %cst_88 : f32 to vector<8x160xf32>
    %375 = arith.addf %374, %373 : vector<8x160xf32>
    %376 = arith.mulf %365, %375 : vector<8x160xf32>
    %c0_89 = arith.constant 0 : index
    %c0_90 = arith.constant 0 : index
    %377 = vector.load %arg18[%c0_89, %c0_90] : memref<160x32xf32, #tpu.memory_space<vmem>>, vector<160x32xf32>
    %cst_91 = arith.constant dense<0.000000e+00> : vector<8x32xf32>
    %378 = tpu.matmul %376, %377, %cst_91 {dimension_numbers = #tpu.dot_dimension_numbers<[1], [0], [0], [1], [0, 0, 1, 1], [], []>} : vector<8x160xf32>, vector<160x32xf32>, vector<8x32xf32> -> vector<8x32xf32>
    %c0_92 = arith.constant 0 : index
    %c0_93 = arith.constant 0 : index
    %379 = vector.load %arg19[%c0_92, %c0_93] : memref<1x32xf32, #tpu.memory_space<vmem>>, vector<1x32xf32>
    %380 = vector.broadcast %379 : vector<1x32xf32> to vector<8x32xf32>
    %381 = arith.addf %378, %380 : vector<8x32xf32>
    %cst_94 = arith.constant 5.000000e-01 : f32
    %382 = vector.broadcast %cst_94 : f32 to vector<8x32xf32>
    %383 = arith.mulf %382, %381 : vector<8x32xf32>
    %cst_95 = arith.constant 4.471500e-02 : f32
    %384 = vector.broadcast %cst_95 : f32 to vector<8x32xf32>
    %385 = arith.mulf %384, %381 : vector<8x32xf32>
    %386 = arith.mulf %385, %381 : vector<8x32xf32>
    %387 = arith.mulf %386, %381 : vector<8x32xf32>
    %388 = arith.addf %381, %387 : vector<8x32xf32>
    %cst_96 = arith.constant 0.797884583 : f32
    %389 = vector.broadcast %cst_96 : f32 to vector<8x32xf32>
    %390 = arith.mulf %389, %388 : vector<8x32xf32>
    %391 = math.tanh %390 : vector<8x32xf32>
    %cst_97 = arith.constant 1.000000e+00 : f32
    %392 = vector.broadcast %cst_97 : f32 to vector<8x32xf32>
    %393 = arith.addf %392, %391 : vector<8x32xf32>
    %394 = arith.mulf %383, %393 : vector<8x32xf32>
    %c0_98 = arith.constant 0 : index
    %c0_99 = arith.constant 0 : index
    %395 = vector.load %arg20[%c0_98, %c0_99] : memref<8x32xf32, #tpu.memory_space<vmem>>, vector<8x32xf32>
    tpu.vector_store %arg20[%c0_98, %c0_99], %394 {strides = array<i32>} : memref<8x32xf32, #tpu.memory_space<vmem>>, vector<8x32xf32>,
    return
  }
}

</mosaic_0001>

<bundles_post_ra>
// kernel: tpu_custom_call.1
= control target key start
LH: loop header
LB: loop body
LE: loop exit
PB: predicated region body
PF: predicated region fallthrough
CT: control target
= control target key end

     0   :  { %s3065_s0 = inlined_call_operand.vmem [shape: s32[40,2], index: 0, kind: input, shape index: {}]   ;;  %s3066_s1 = inlined_call_operand.vmem [shape: f32[8,100], index: 1, kind: input, shape index: {}]   ;;  %s3067_s2 = inlined_call_operand.vmem [shape: f32[64,64], index: 2, kind: input, shape index: {}]   ;;  %s3068_s3 = inlined_call_operand.vmem [shape: f32[64,96], index: 3, kind: input, shape index: {}]   ;;  %s3069_s4 = inlined_call_operand.vmem [shape: f32[1,96], index: 4, kind: input, shape index: {}]   ;;  %s3070_s5 = inlined_call_operand.vmem [shape: f32[96,32], index: 5, kind: input, shape index: {}]   ;;  %s3071_s6 = inlined_call_operand.hbm [shape: f32[1,32], index: 6, kind: input, shape index: {}]   ;;  %s3072_s7 = inlined_call_operand.hbm [shape: f32[100,640], index: 7, kind: input, shape index: {}]   ;;  %s3073_s8 = inlined_call_operand.vmem [shape: f32[1,640], index: 8, kind: input, shape index: {}]   ;;  %s3074_s9 = inlined_call_operand.vmem [shape: f32[32,128], index: 9, kind: input, shape index: {}]   ;;  %s3075_s10 = inlined_call_operand.vmem [shape: f32[32,128], index: 10, kind: input, shape index: {}]   ;;  %s3076_s11 = inlined_call_operand.vmem [shape: f32[32,128], index: 11, kind: input, shape index: {}]   ;;  %s3077_s12 = inlined_call_operand.vmem [shape: f32[1,128], index: 12, kind: input, shape index: {}]   ;;  %s3078_s13 = inlined_call_operand.vmem [shape: f32[32,128], index: 13, kind: input, shape index: {}]   ;;  %s3079_s14 = inlined_call_operand.vmem [shape: f32[32,128], index: 14, kind: input, shape index: {}]   ;;  %s3080_s15 = inlined_call_operand.vmem [shape: f32[1,128], index: 15, kind: input, shape index: {}]   ;;  %s3081_s16 = inlined_call_operand.hbm [shape: f32[160,160], index: 16, kind: input, shape index: {}]   ;;  %s3082_s17 = inlined_call_operand.vmem [shape: f32[1,160], index: 17, kind: input, shape index: {}]   ;;  %s3083_s18 = inlined_call_operand.vmem [shape: f32[160,32], index: 18, kind: input, shape index: {}]   ;;  %s3084_s19 = inlined_call_operand.vmem [shape: f32[1,32], index: 19, kind: input, shape index: {}]   ;;  %s3085_s20 = inlined_call_operand.hbm [shape: f32[8,32], index: 20, kind: output, shape index: {}]  }
   0x1   :  { %3089 = sst [smem:[#allocation12_spill]] %s3065_s0 }
   0x2   :  { %3090 = sst [smem:[#allocation13_spill]] %s3066_s1 }
   0x3   :  { %3091 = sst [smem:[#allocation14_spill]] %s3067_s2 }
   0x4   :  { %3092 = sst [smem:[#allocation15_spill]] %s3068_s3 }
   0x5   :  { %3093 = sst [smem:[#allocation16_spill]] %s3069_s4 }
   0x6   :  { %25 = vsyncpa [#allocation3], 0 }
   0x7   :  { %26 = vsyncpa [#allocation6], 0  ;;  %s55_s23 = sshll.u32 %s3072_s7, 4  ;;  %s56_s23 = int_to_ptr.hbm [resolvable:$true] %s55_s23 }
   0x8   :  { %27 = vsyncpa [#allocation4], 0  ;;  %s2327_s24 = smov [#allocation5]   ;;  %s45_s26 = sshll.u32 %s3071_s6, 4  ;;  %s46_s26 = int_to_ptr.hbm [resolvable:$true] %s45_s26 }
   0x9   :  { %s57_s2 = sshll.u32 %s2327_s24, 4  ;;  %s2328_s27 = smov 640   ;;  %s58_s2 = int_to_ptr.vmem [resolvable:$true] %s57_s2 }
   0xa   :  { %s2329_s28 = smov 40   ;;  %s2330_s4 = smov [#allocation2]  }
   0xb   :  { %63 = dma.hbm_to_vmem [thread:$0]  %s56_s23, 8320, %s58_s2, [#allocation6], %s2328_s27, %s2328_s27, %s2329_s28  }
   0xc   :  { %s47_s29 = sshll.u32 %s2330_s4, 4  ;;  %s84_s21 = sshll.u32 %s3081_s16, 4  ;;  %s48_s29 = int_to_ptr.vmem [resolvable:$true] %s47_s29  ;;  %s85_s21 = int_to_ptr.hbm [resolvable:$true] %s84_s21 }
   0xd   :  { %50 = dma.hbm_to_vmem [thread:$0]  %s46_s26, 16, %s48_s29, [#allocation3]  }
   0xe   :  { %s2331_s7 = smov [#allocation7]   ;;  %s2332_s22 = smov 256  }
   0xf   :  { %s86_s1 = sshll.u32 %s2331_s7, 4  ;;  %s2333_s24 = smov 16   ;;  %s87_s1 = int_to_ptr.vmem [resolvable:$true] %s86_s1 }
  0x10   :  { %92 = dma.hbm_to_vmem [thread:$0]  %s85_s21, 5120, %s87_s1, [#allocation6], %s2332_s22, %s2332_s22, %s2333_s24  }
  0x11   :  { %2321 = dma.done.wait [#allocation3], 16  }
  0x12   :  { %2322 = vsyncadd [#allocation3], 4294967280 }
  0x13   :  { %2323 = dma.done.wait [#allocation6], 13440  }
  0x14   :  { %2324 = vsyncadd [#allocation6], 4294953856  ;;  %v2334_v0 = vmov 1   ;;  %s3094_s16 = sld [smem:[#allocation12_spill]]  ;;  %v2335_v6 = vmov 0   ;;  %v116_v7 = vlaneseq  ;;  %v2336_v11 = vmov 0.0  }
  0x15   :  { %2066 = vset.pattern.permute.xlu1 %v2334_v0  ;;  %2065 = vset.pattern.permute.xlu0 %v2334_v0  ;;  %s2337_s30 = smov 32   ;;  %s3095_s7 = sld [smem:[#allocation14_spill]]  ;;  %vm212_vm6 = vcmask 523264   ;;  %vm198_vm7 = vcmask 261120   ;;  %v375_v61 = vld [vmem:[%s3070_s5 + $0x58] sm:$0xff]  ;;  %v374_v62 = vld [vmem:[%s3070_s5 + $0x50] sm:$0xff] }
  0x16   :  { %2067 = vset.pattern.permute.xlu2 %v2334_v0  ;;  %v2470_v8 = vand.u32 127, %v116_v7  ;;  %s3096_s1 = sld [smem:[#allocation15_spill]]  ;;  %400 = vmatpush.msra.mxu2 %v375_v61  ;;  %v373_v63 = vld [vmem:[%s3070_s5 + $0x48] sm:$0xff]  ;;  %vm555_vm12 = vcmask 1043456   ;;  %vm380_vm13 = vcmask 785408   ;;  %vm551_vm14 = vcmask 818176  }
  0x17   :  { %v365_v7 = vld [vmem:[%s3070_s5 + $0x8] sm:$0xff]  ;;  %s3097_s2 = sld [smem:[#allocation16_spill]]  ;;  %s1965_s27 = sshll.u32 %s3085_s20, 4  ;;  %s1966_s27 = int_to_ptr.hbm [resolvable:$true] %s1965_s27 }
  0x18   :  { %401 = vmatpush.msra.mxu2 %v374_v62 }
  0x1a   :  { %v113_v1 = vld [vmem:[%s3094_s16 + $0x10] sm:$0xff]  ;;  %v111_v2 = vld [vmem:[%s3094_s16] sm:$0xff]  ;;  %v114_v4 = vld [vmem:[%s3094_s16 + $0x18] sm:$0xff]  ;;  %402 = vmatpush.msra.mxu2 %v373_v63 }
  0x1b   :  { %155 = vperm.xlu1 %2066, %v113_v1   ;;  %149 = vperm.xlu0 %2065, %v111_v2   ;;  %v115_v3 = vld [vmem:[%s3094_s16 + $0x20] sm:$0xff]  ;;  %v112_v5 = vld [vmem:[%s3094_s16 + $0x8] sm:$0xff]  ;;  %v211_v20 = vld [vmem:[%s3095_s7 + $0x38] sm:$0xff] }
  0x1c   :  { %161 = vperm.xlu2 %2067, %v115_v3   ;;  %v210_v21 = vld [vmem:[%s3095_s7 + $0x30] sm:$0xff]  ;;  %236 = vmatpush.msra.mxu0 %v211_v20  ;;  %v209_v22 = vld [vmem:[%s3095_s7 + $0x28] sm:$0xff]  ;;  %v208_v23 = vld [vmem:[%s3095_s7 + $0x20] sm:$0xff] }
  0x1d   :  { %v207_v24 = vld [vmem:[%s3095_s7 + $0x18] sm:$0xff]  ;;  %v206_v25 = vld [vmem:[%s3095_s7 + $0x10] sm:$0xff]  ;;  %v205_v26 = vld [vmem:[%s3095_s7 + $0x8] sm:$0xff] }
  0x1e   :  { %237 = vmatpush.msra.mxu0 %v210_v21  ;;  %v204_v27 = vld [vmem:[%s3095_s7] sm:$0xff]  ;;  %v267_v33 = vld [vmem:[%s3096_s1 + $0x38] sm:$0xff]  ;;  %v266_v34 = vld [vmem:[%s3096_s1 + $0x30] sm:$0xff]  ;;  %s2338_s7 = smov 64  }
  0x1f   :  { %295 = vmatpush.msra.mxu1 %v267_v33  ;;  %v265_v35 = vld [vmem:[%s3096_s1 + $0x28] sm:$0xff]  ;;  %v264_v38 = vld [vmem:[%s3096_s1 + $0x20] sm:$0xff]  ;;  %v263_v40 = vld [vmem:[%s3096_s1 + $0x18] sm:$0xff] }
  0x20   :  { %238 = vmatpush.msra.mxu0 %v209_v22  ;;  %v262_v42 = vld [vmem:[%s3096_s1 + $0x10] sm:$0xff]  ;;  %v261_v45 = vld [vmem:[%s3096_s1 + $0x8] sm:$0xff]  ;;  %v260_v55 = vld [vmem:[%s3096_s1] sm:$0xff]  ;;  %s3098_s1 = sld [smem:[#allocation13_spill]] }
  0x21   :  { %296 = vmatpush.msra.mxu1 %v266_v34  ;;  %v513_v22 = vld [vmem:[#allocation5 + $0x138] sm:$0xff]  ;;  %v524_v34 = vld [vmem:[#allocation5 + $0x190] sm:$0xff] }
  0x22   :  { %239 = vmatpush.msra.mxu0 %v208_v23  ;;  %v508_v23 = vld [vmem:[#allocation5 + $0x110] sm:$0xff] }
  0x23   :  { %158 = vperm.xlu1 %2066, %v114_v4   ;;  %152 = vperm.xlu0 %2065, %v112_v5  }
  0x24   :  { %2068 = vset.pattern.permute.xlu2 %v2335_v6  ;;  %240 = vmatpush.msra.mxu0 %v207_v24  ;;  %v534_v24 = vld [vmem:[#allocation5 + $0x1e0] sm:$0xf] }
  0x25   :  { %119 = vperm.xlu2 %2068, %v111_v2   ;;  %297 = vmatpush.msra.mxu1 %v265_v35  ;;  %v370_v2 = vld [vmem:[%s3070_s5 + $0x30] sm:$0xff]  ;;  %v498_v35 = vld [vmem:[#allocation5 + $0xc0] sm:$0xff] }
  0x26   :  { %241 = vmatpush.msra.mxu0 %v206_v25  ;;  %2001 = vmatpush.msk.msra.mxu3 %vm555_vm12, %v534_v24 }
  0x27   :  { %298 = vmatpush.msra.mxu1 %v264_v38 }
  0x28   :  { %242 = vmatpush.msra.mxu0 %v205_v26 }
  0x29   :  { %299 = vmatpush.msra.mxu1 %v263_v40  ;;  %v514_v40 = vld [vmem:[#allocation5 + $0x140] sm:$0xff] }
  0x2a   :  { %243 = vmatpush.msra.mxu0 %v204_v27  ;;  %v529_v27 = vld [vmem:[#allocation5 + $0x1b8] sm:$0xff] }
  0x2b   :  { %2069 = vset.pattern.permute.xlu1 %v2335_v6  ;;  %2070 = vset.pattern.permute.xlu0 %v2335_v6  ;;  %v366_v6 = vld [vmem:[%s3070_s5 + $0x10] sm:$0xff] }
  0x2c   :  { %122 = vperm.xlu1 %2069, %v112_v5   ;;  %300 = vmatpush.msra.mxu1 %v262_v42  ;;  %v367_v5 = vld [vmem:[%s3070_s5 + $0x18] sm:$0xff] }
  0x2d   :  { %575 = vmatpush.msra.mxu3 %v529_v27 }
  0x2e   :  { %301 = vmatpush.msra.mxu1 %v261_v45 }
  0x2f   :  { %576 = vmatpush.msra.mxu3 %v524_v34  ;;  %v2073_v34 = vld [vmem:[#allocation2] ss:$0 sm:$0xff] }
  0x30   :  { %302 = vmatpush.msra.mxu1 %v260_v55 }
  0x76   :  { %v162_v18 = vpop.permute.xlu2 %161 }
  0x77   :  { %vm167_vm4 = vcmp.eq.s32.totalorder %v2470_v8, %v162_v18  ;;  %v518_v18 = vld [vmem:[#allocation5 + $0x160] sm:$0xff] }
  0x78   :  { %v1985_v19 = vsel %vm167_vm4, 1.0, %v2336_v11 }
  0x7f   :  { %v120_v28 = vpop.permute.xlu2 %119 }
  0x80   :  { %vm133_vm5 = vcmp.eq.s32.totalorder %v2470_v8, %v120_v28  ;;  %v503_v28 = vld [vmem:[#allocation5 + $0xe8] sm:$0xff] }
  0x81   :  { %v1976_v29 = vsel %vm133_vm5, 1.0, %v2336_v11 }
  0x8d   :  { %v156_v9 = vpop.permute.xlu1 %155  ;;  %v150_v10 = vpop.permute.xlu0 %149 }
  0x8e   :  { %vm165_vm0 = vcmp.eq.s32.totalorder %v2470_v8, %v156_v9  ;;  %vm163_vm1 = vcmp.eq.s32.totalorder %v2470_v8, %v150_v10  ;;  %v538_v9 = vld [vmem:[#allocation5 + $0x200] sm:$0xf]  ;;  %v533_v10 = vld [vmem:[#allocation5 + $0x1d8] sm:$0xff] }
  0x8f   :  { %v1983_v12 = vsel %vm165_vm0, 1.0, %v2336_v11  ;;  %v1981_v13 = vsel %vm163_vm1, 1.0, %v2336_v11 }
  0x90   :  { %187 = vrot.lane.b32.xlu1 %v1983_v12, %s2337_s30  ;;  %183 = vrot.lane.b32.xlu0 %v1981_v13, %s2337_s30  ;;  %v2600_v12 = vld [vmem:[%s3097_s2] ss:$0 sm:$0xff]  ;;  %v528_v13 = vld [vmem:[#allocation5 + $0x1b0] sm:$0xff] }
  0x95   :  { %v159_v14 = vpop.permute.xlu1 %158  ;;  %v153_v15 = vpop.permute.xlu0 %152 }
  0x96   :  { %vm166_vm2 = vcmp.eq.s32.totalorder %v2470_v8, %v159_v14  ;;  %vm164_vm3 = vcmp.eq.s32.totalorder %v2470_v8, %v153_v15 }
  0x97   :  { %v1984_v16 = vsel %vm166_vm2, 1.0, %v2336_v11  ;;  %v1982_v17 = vsel %vm164_vm3, 1.0, %v2336_v11 }
  0x98   :  { %189 = vrot.lane.b32.xlu1 %v1984_v16, %s2337_s30  ;;  %125 = vperm.xlu0 %2070, %v113_v1   ;;  %v371_v1 = vld [vmem:[%s3070_s5 + $0x38] sm:$0xff] }
  0x99   :  { %185 = vrot.lane.b32.xlu2 %v1982_v17, %s2337_s30  ;;  %v523_v17 = vld [vmem:[#allocation5 + $0x188] sm:$0xff] }
  0x9e   :  { %v123_v30 = vpop.permute.xlu1 %122 }
  0x9f   :  { %vm134_vm8 = vcmp.eq.s32.totalorder %v2470_v8, %v123_v30 }
  0xa0   :  { %191 = vrot.lane.b32.xlu0 %v1985_v19, %s2337_s30  ;;  %v1977_v36 = vsel %vm134_vm8, 1.0, %v2336_v11 }
  0xa1   :  { %128 = vperm.xlu2 %2068, %v114_v4   ;;  %2071 = vset.pattern.permute.xlu0 %v2334_v0  ;;  %v372_v0 = vld [vmem:[%s3070_s5 + $0x40] sm:$0xff] }
  0xa2   :  { %403 = vmatpush.msra.mxu2 %v372_v0  ;;  %v368_v4 = vld [vmem:[%s3070_s5 + $0x20] sm:$0xff] }
  0xa3   :  { %v489_v0 = vld [vmem:[#allocation5 + $0x78] sm:$0xff] }
  0xa4   :  { %404 = vmatpush.msra.mxu2 %v371_v1 }
  0xa6   :  { %405 = vmatpush.msra.mxu2 %v370_v2 }
  0xa9   :  { %131 = vperm.xlu2 %2068, %v115_v3   ;;  %v369_v3 = vld [vmem:[%s3070_s5 + $0x28] sm:$0xff] }
  0xaa   :  { %406 = vmatpush.msra.mxu2 %v369_v3 }
  0xac   :  { %407 = vmatpush.msra.mxu2 %v368_v4 }
  0xae   :  { %408 = vmatpush.msra.mxu2 %v367_v5  ;;  %v2618_v5 = vld [vmem:[%s3074_s9 + $0x18] sm:$0xff] }
  0xb0   :  { %409 = vmatpush.msra.mxu2 %v366_v6  ;;  %v484_v6 = vld [vmem:[#allocation5 + $0x50] sm:$0xff] }
  0xb2   :  { %410 = vmatpush.msra.mxu2 %v365_v7  ;;  %v2623_v7 = vld [vmem:[%s3074_s9 + $0x10] sm:$0xff] }
  0xf3   :  { %v186_v37 = vpop.permute.xlu2 %185 }
  0xf4   :  { %v200_v41 = vsel %vm198_vm7, %v1977_v36, %v186_v37  ;;  %v519_v36 = vld [vmem:[#allocation5 + $0x168] sm:$0xff] }
  0xf5   :  { %577 = vmatpush.msra.mxu3 %v519_v36 }
  0xf7   :  { %578 = vmatpush.msra.mxu3 %v514_v40 }
  0xfb   :  { %v129_v47 = vpop.permute.xlu2 %128 }
  0xfc   :  { %vm136_vm10 = vcmp.eq.s32.totalorder %v2470_v8, %v129_v47  ;;  %v509_v47 = vld [vmem:[#allocation5 + $0x118] sm:$0xff] }
  0xfd   :  { %v1979_v49 = vsel %vm136_vm10, 1.0, %v2336_v11  ;;  %579 = vmatpush.msra.mxu3 %v509_v47 }
 0x102   :  { %v184_v31 = vpop.permute.xlu0 %183  ;;  %v188_v43 = vpop.permute.xlu1 %187 }
 0x103   :  { %v199_v32 = vsel %vm198_vm7, %v1976_v29, %v184_v31  ;;  %v132_v51 = vpop.permute.xlu2 %131 }
 0x104   :  { %1986 = vmatmul.msk.f32.vlgmr.msra.gmra.mxu0 %vm212_vm6, %v199_v32  ;;  %vm137_vm11 = vcmp.eq.s32.totalorder %v2470_v8, %v132_v51 }
 0x105   :  { %v1980_v53 = vsel %vm137_vm11, 1.0, %v2336_v11 }
 0x10a   :  { %v126_v39 = vpop.permute.xlu0 %125  ;;  %v190_v48 = vpop.permute.xlu1 %189 }
 0x10b   :  { %vm135_vm9 = vcmp.eq.s32.totalorder %v2470_v8, %v126_v39  ;;  %v202_v50 = vsel %vm198_vm7, %v1979_v49, %v190_v48  ;;  %v364_v8 = vld [vmem:[%s3070_s5] sm:$0xff]  ;;  %s2340_s5 = smov [#allocation8]  }
 0x10c   :  { %1987 = vmatmul.msk.f32.gmra.mxu0 %vm212_vm6, %v200_v41  ;;  %v1978_v44 = vsel %vm135_vm9, 1.0, %v2336_v11  ;;  %411 = vmatpush.msra.mxu2 %v364_v8  ;;  %v493_v39 = vld [vmem:[#allocation5 + $0x98] sm:$0xff]  ;;  %v488_v41 = vld [vmem:[#allocation5 + $0x70] sm:$0xff]  ;;  %s1963_s25 = sshll.u32 %s2340_s5, 4  ;;  %s1964_s25 = int_to_ptr.vmem [resolvable:$true] %s1963_s25 }
 0x10d   :  { %v201_v46 = vsel %vm198_vm7, %v1978_v44, %v188_v43 }
 0x10e   :  { %2009 = vmatpush.msk.msrb.mxu2 %vm555_vm12, %v538_v9 }
 0x110   :  { %655 = vmatpush.msrb.mxu2 %v533_v10  ;;  %v479_v10 = vld [vmem:[#allocation5 + $0x28] sm:$0xff] }
 0x112   :  { %v192_v52 = vpop.permute.xlu0 %191  ;;  %656 = vmatpush.msrb.mxu2 %v528_v13  ;;  %v2630_v13 = vld [vmem:[%s3074_s9 + $0x8] sm:$0xff] }
 0x113   :  { %v203_v54 = vsel %vm198_vm7, %v1980_v53, %v192_v52  ;;  %v504_v52 = vld [vmem:[#allocation5 + $0xf0] sm:$0xff]  ;;  %v483_v53 = vld [vmem:[#allocation5 + $0x48] sm:$0xff] }
 0x114   :  { %1988 = vmatmul.msk.f32.gmra.mxu0 %vm212_vm6, %v201_v46  ;;  %657 = vmatpush.msrb.mxu2 %v523_v17 }
 0x115   :  { %580 = vmatpush.msra.mxu3 %v504_v52 }
 0x116   :  { %658 = vmatpush.msrb.mxu2 %v518_v18 }
 0x118   :  { %659 = vmatpush.msrb.mxu2 %v513_v22 }
 0x11a   :  { %660 = vmatpush.msrb.mxu2 %v508_v23 }
 0x11c   :  { %1989 = vmatmul.msk.f32.gmra.mxu0 %vm212_vm6, %v202_v50  ;;  %661 = vmatpush.msrb.mxu2 %v503_v28 }
 0x11e   :  { %662 = vmatpush.msrb.mxu2 %v498_v35 }
 0x120   :  { %663 = vmatpush.msrb.mxu2 %v493_v39 }
 0x122   :  { %664 = vmatpush.msrb.mxu2 %v488_v41 }
 0x124   :  { %1990 = vmatmul.msk.f32.gmra.mxu0 %vm212_vm6, %v203_v54  ;;  %v499_v54 = vld [vmem:[#allocation5 + $0xc8] sm:$0xff]  ;;  %665 = vmatpush.msrb.mxu2 %v483_v53 }
 0x125   :  { %581 = vmatpush.msra.mxu3 %v499_v54 }
 0x181   :  { %v245_v56 = vpop.f32.mrf.mxu0 }
 0x182   :  { %1991 = vmatmul.msk.f32.vlgmr.msra.gmra.mxu1 %vm212_vm6, %v245_v56 }
 0x189   :  { %v248_v57 = vpop.f32.mrf.mxu0 }
 0x18a   :  { %1992 = vmatmul.msk.f32.gmra.mxu1 %vm212_vm6, %v248_v57  ;;  %v478_v57 = vld [vmem:[#allocation5 + $0x20] sm:$0xff] }
 0x18b   :  { %666 = vmatpush.msrb.mxu2 %v478_v57 }
 0x191   :  { %v251_v58 = vpop.f32.mrf.mxu0 }
 0x192   :  { %1993 = vmatmul.msk.f32.gmra.mxu1 %vm212_vm6, %v251_v58  ;;  %v494_v58 = vld [vmem:[#allocation5 + $0xa0] sm:$0xff] }
 0x193   :  { %582 = vmatpush.msra.mxu3 %v494_v58 }
 0x195   :  { %583 = vmatpush.msra.mxu3 %v489_v0 }
 0x197   :  { %584 = vmatpush.msra.mxu3 %v484_v6 }
 0x199   :  { %v254_v59 = vpop.f32.mrf.mxu0  ;;  %585 = vmatpush.msra.mxu3 %v479_v10  ;;  %v531_v10 = vld [vmem:[#allocation5 + $0x1c8] sm:$0xff] }
 0x19a   :  { %1994 = vmatmul.msk.f32.gmra.mxu1 %vm212_vm6, %v254_v59 }
 0x1a1   :  { %v257_v60 = vpop.f32.mrf.mxu0 }
 0x1a2   :  { %1995 = vmatmul.msk.f32.gmra.mxu1 %vm212_vm6, %v257_v60 }
 0x1ff   :  { %v304_v14 = vpop.f32.mrf.mxu1 }
 0x200   :  { %v305_v15 = vadd.f32 %v2600_v12, %v304_v14  ;;  %v474_v14 = vld [vmem:[#allocation5] sm:$0xff] }
 0x201   :  { %586 = vmatpush.msra.mxu3 %v474_v14  ;;  %v535_v14 = vld [vmem:[#allocation5 + $0x1e8] sm:$0xf] }
 0x202   :  { %v324_v16 = vmul.f32 0.044715, %v305_v15  ;;  %v319_v45 = vmul.f32 0.5, %v305_v15 }
 0x203   :  { %2003 = vmatpush.msk.msrb.mxu3 %vm555_vm12, %v535_v14 }
 0x204   :  { %v329_v19 = vmul.f32 %v324_v16, %v305_v15 }
 0x206   :  { %v334_v20 = vmul.f32 %v329_v19, %v305_v15  ;;  %v2637_v19 = vld [vmem:[%s3074_s9] sm:$0xff] }
 0x207   :  { %v307_v21 = vpop.f32.mrf.mxu1 }
 0x208   :  { %v308_v25 = vadd.f32 %v2600_v12, %v307_v21  ;;  %v339_v26 = vadd.f32 %v334_v20, %v305_v15  ;;  %v2642_v21 = vld [vmem:[%s3098_s1] sm:$0xff] }
 0x209   :  { %2002 = vmatmul.msk.f32.vlgmr.msra.gmra.mxu3 %vm551_vm14, %v2642_v21 }
 0x20a   :  { %v325_v29 = vmul.f32 0.044715, %v308_v25  ;;  %v344_v30 = vmul.f32 0.7978846, %v339_v26  ;;  %v320_v62 = vmul.f32 0.5, %v308_v25 }
 0x20c   :  { %2077 = vtanh.f32 %v344_v30  ;;  %v330_v31 = vmul.f32 %v325_v29, %v308_v25 }
 0x20e   :  { %v335_v32 = vmul.f32 %v330_v31, %v308_v25 }
 0x20f   :  { %v310_v33 = vpop.f32.mrf.mxu1 }
 0x210   :  { %v2606_v37 = vadd.f32 %v2600_v12, %v310_v33  ;;  %v340_v38 = vadd.f32 %v335_v32, %v308_v25 }
 0x212   :  { %v2078_v42 = vpop.eup %2077  ;;  %v326_v43 = vmul.f32 0.044715, %v2606_v37  ;;  %v345_v44 = vmul.f32 0.7978846, %v340_v38  ;;  %v321_v18 = vmul.f32 0.5, %v2606_v37 }
 0x213   :  { %v354_v46 = vadd.f32 1.0, %v2078_v42 }
 0x214   :  { %2079 = vtanh.f32 %v345_v44  ;;  %v331_v48 = vmul.f32 %v326_v43, %v2606_v37  ;;  %v2667_v44 = vld [vmem:[%s3073_s8] sm:$0x1f] }
 0x215   :  { %v359_v49 = vmul.f32 %v354_v46, %v319_v45  ;;  %v541_v46 = vperm.slane %v2667_v44, 0 }
 0x216   :  { %v336_v50 = vmul.f32 %v331_v48, %v2606_v37 }
 0x217   :  { %v313_v51 = vpop.f32.mrf.mxu1  ;;  %1996 = vmatmul.msk.f32.vlgmr.msra.gmra.mxu2 %vm380_vm13, %v359_v49 }
 0x218   :  { %v314_v55 = vadd.f32 %v2600_v12, %v313_v51  ;;  %v341_v56 = vadd.f32 %v336_v50, %v2606_v37  ;;  %690 = vmatpush.msra.mxu2 %v2618_v5 }
 0x21a   :  { %v2080_v59 = vpop.eup %2079  ;;  %v327_v60 = vmul.f32 0.044715, %v314_v55  ;;  %v346_v61 = vmul.f32 0.7978846, %v341_v56  ;;  %691 = vmatpush.msra.mxu2 %v2623_v7  ;;  %v322_v27 = vmul.f32 0.5, %v314_v55 }
 0x21b   :  { %v355_v63 = vadd.f32 1.0, %v2080_v59 }
 0x21c   :  { %2081 = vtanh.f32 %v346_v61  ;;  %v332_v1 = vmul.f32 %v327_v60, %v314_v55  ;;  %692 = vmatpush.msra.mxu2 %v2630_v13 }
 0x21d   :  { %v360_v2 = vmul.f32 %v355_v63, %v320_v62 }
 0x21e   :  { %v337_v3 = vmul.f32 %v332_v1, %v314_v55  ;;  %693 = vmatpush.msra.mxu2 %v2637_v19 }
 0x21f   :  { %v316_v4 = vpop.f32.mrf.mxu1  ;;  %1997 = vmatmul.msk.f32.gmra.mxu2 %vm380_vm13, %v360_v2 }
 0x220   :  { %v317_v8 = vadd.f32 %v2600_v12, %v316_v4  ;;  %v342_v9 = vadd.f32 %v337_v3, %v314_v55 }
 0x222   :  { %v2082_v15 = vpop.eup %2081  ;;  %v328_v16 = vmul.f32 0.044715, %v317_v8  ;;  %v347_v17 = vmul.f32 0.7978846, %v342_v9  ;;  %v323_v31 = vmul.f32 0.5, %v317_v8 }
 0x223   :  { %v356_v12 = vadd.f32 1.0, %v2082_v15  ;;  %v536_v9 = vld [vmem:[#allocation5 + $0x1f0] sm:$0xf]  ;;  %v526_v15 = vld [vmem:[#allocation5 + $0x1a0] sm:$0xff] }
 0x224   :  { %2083 = vtanh.f32 %v347_v17  ;;  %v333_v20 = vmul.f32 %v328_v16, %v317_v8  ;;  %2005 = vmatpush.msk.msrb.mxu0 %vm555_vm12, %v536_v9  ;;  %v530_v16 = vld [vmem:[#allocation5 + $0x1c0] sm:$0xff]  ;;  %v525_v17 = vld [vmem:[#allocation5 + $0x198] sm:$0xff] }
 0x225   :  { %v361_v22 = vmul.f32 %v356_v12, %v321_v18  ;;  %v521_v18 = vld [vmem:[#allocation5 + $0x178] sm:$0xff]  ;;  %595 = vmatpush.msrb.mxu3 %v530_v16  ;;  %v520_v12 = vld [vmem:[#allocation5 + $0x170] sm:$0xff] }
 0x226   :  { %v338_v23 = vmul.f32 %v333_v20, %v317_v8  ;;  %615 = vmatpush.msrb.mxu0 %v531_v10  ;;  %v516_v20 = vld [vmem:[#allocation5 + $0x150] sm:$0xff] }
 0x227   :  { %1998 = vmatmul.msk.f32.gmra.mxu2 %vm380_vm13, %v361_v22  ;;  %596 = vmatpush.msrb.mxu3 %v525_v17  ;;  %v515_v22 = vld [vmem:[#allocation5 + $0x148] sm:$0xff]  ;;  %v537_v17 = vld [vmem:[#allocation5 + $0x1f8] sm:$0xf] }
 0x228   :  { %v343_v24 = vadd.f32 %v338_v23, %v317_v8  ;;  %616 = vmatpush.msrb.mxu0 %v526_v15  ;;  %v511_v23 = vld [vmem:[#allocation5 + $0x128] sm:$0xff]  ;;  %2007 = vmatpush.msk.msrb.mxu1 %vm555_vm12, %v537_v17 }
 0x229   :  { %597 = vmatpush.msrb.mxu3 %v520_v12  ;;  %v527_v12 = vld [vmem:[#allocation5 + $0x1a8] sm:$0xff] }
 0x22a   :  { %v2084_v25 = vpop.eup %2083  ;;  %v348_v26 = vmul.f32 0.7978846, %v343_v24  ;;  %617 = vmatpush.msrb.mxu0 %v521_v18  ;;  %v510_v24 = vld [vmem:[#allocation5 + $0x120] sm:$0xff]  ;;  %v532_v18 = vld [vmem:[#allocation5 + $0x1d0] sm:$0xff] }
 0x22b   :  { %v357_v28 = vadd.f32 1.0, %v2084_v25  ;;  %v506_v25 = vld [vmem:[#allocation5 + $0x100] sm:$0xff]  ;;  %598 = vmatpush.msrb.mxu3 %v515_v22  ;;  %635 = vmatpush.msrb.mxu1 %v532_v18  ;;  %v517_v22 = vld [vmem:[#allocation5 + $0x158] sm:$0xff] }
 0x22c   :  { %2085 = vtanh.f32 %v348_v26  ;;  %618 = vmatpush.msrb.mxu0 %v516_v20  ;;  %v505_v26 = vld [vmem:[#allocation5 + $0xf8] sm:$0xff]  ;;  %v522_v20 = vld [vmem:[#allocation5 + $0x180] sm:$0xff] }
 0x22d   :  { %v362_v29 = vmul.f32 %v357_v28, %v322_v27  ;;  %v501_v27 = vld [vmem:[#allocation5 + $0xd8] sm:$0xff]  ;;  %599 = vmatpush.msrb.mxu3 %v510_v24  ;;  %v500_v28 = vld [vmem:[#allocation5 + $0xd0] sm:$0xff]  ;;  %636 = vmatpush.msrb.mxu1 %v527_v12  ;;  %v502_v24 = vld [vmem:[#allocation5 + $0xe0] sm:$0xff] }
 0x22e   :  { %619 = vmatpush.msrb.mxu0 %v511_v23  ;;  %v512_v23 = vld [vmem:[#allocation5 + $0x130] sm:$0xff] }
 0x22f   :  { %1999 = vmatmul.msk.f32.gmra.mxu2 %vm380_vm13, %v362_v29  ;;  %v496_v29 = vld [vmem:[#allocation5 + $0xb0] sm:$0xff]  ;;  %600 = vmatpush.msrb.mxu3 %v505_v26 }
 0x230   :  { %620 = vmatpush.msrb.mxu0 %v506_v25  ;;  %637 = vmatpush.msrb.mxu1 %v522_v20  ;;  %v497_v25 = vld [vmem:[#allocation5 + $0xb8] sm:$0xff]  ;;  %v492_v26 = vld [vmem:[#allocation5 + $0x90] sm:$0xff] }
 0x231   :  { %601 = vmatpush.msrb.mxu3 %v500_v28  ;;  %v482_v28 = vld [vmem:[#allocation5 + $0x40] sm:$0xff] }
 0x232   :  { %v2086_v30 = vpop.eup %2085  ;;  %621 = vmatpush.msrb.mxu0 %v501_v27  ;;  %638 = vmatpush.msrb.mxu1 %v517_v22  ;;  %v487_v27 = vld [vmem:[#allocation5 + $0x68] sm:$0xff] }
 0x233   :  { %v358_v32 = vadd.f32 1.0, %v2086_v30  ;;  %v495_v30 = vld [vmem:[#allocation5 + $0xa8] sm:$0xff] }
 0x234   :  { %622 = vmatpush.msrb.mxu0 %v496_v29  ;;  %602 = vmatpush.msrb.mxu3 %v495_v30  ;;  %v477_v29 = vld [vmem:[#allocation5 + $0x18] sm:$0xff] }
 0x235   :  { %v363_v33 = vmul.f32 %v358_v32, %v323_v31  ;;  %v491_v31 = vld [vmem:[#allocation5 + $0x88] sm:$0xff]  ;;  %v490_v32 = vld [vmem:[#allocation5 + $0x80] sm:$0xff]  ;;  %639 = vmatpush.msrb.mxu1 %v512_v23 }
 0x236   :  { %623 = vmatpush.msrb.mxu0 %v491_v31  ;;  %603 = vmatpush.msrb.mxu3 %v490_v32 }
 0x237   :  { %2000 = vmatmul.msk.f32.gmra.mxu2 %vm380_vm13, %v363_v33  ;;  %v486_v33 = vld [vmem:[#allocation5 + $0x60] sm:$0xff] }
 0x238   :  { %624 = vmatpush.msrb.mxu0 %v486_v33  ;;  %v543_v33 = vperm.slane %v2667_v44, 2 }
 0x23f   :  { %2010 = vmatmul.msk.f32.vlgmr.msrb.gmra.mxu2 %vm551_vm14, %v2642_v21 }
 0x247   :  { %694 = vmatmul.f32.vlgmr.msra.gmra.mxu2 %v2336_v11 }
 0x28c   :  { %v588_v47 = vpop.f32.mrf.mxu3 }
 0x28d   :  { %v589_v48 = vadd.f32 %v588_v47, %v541_v46 }
 0x29a   :  { %v413_v35 = vpop.f32.mrf.mxu2 }
 0x29b   :  { %v2654_v36 = vadd.f32 %v2073_v34, %v413_v35  ;;  %v481_v35 = vld [vmem:[#allocation5 + $0x38] sm:$0xff] }
 0x29c   :  { %625 = vmatpush.msrb.mxu0 %v481_v35 }
 0x2a2   :  { %v2656_v37 = vpop.f32.mrf.mxu2 }
 0x2aa   :  { %v419_v38 = vpop.f32.mrf.mxu2 }
 0x2ab   :  { %v2658_v39 = vadd.f32 %v2073_v34, %v419_v38  ;;  %v480_v38 = vld [vmem:[#allocation5 + $0x30] sm:$0xff] }
 0x2b2   :  { %v422_v40 = vpop.f32.mrf.mxu2 }
 0x2b3   :  { %v2660_v41 = vadd.f32 %v2073_v34, %v422_v40  ;;  %v476_v40 = vld [vmem:[#allocation5 + $0x10] sm:$0xff] }
 0x2b4   :  { %626 = vmatpush.msrb.mxu0 %v476_v40 }
 0x2b5   :  { %2006 = vmatmul.msk.f32.vlgmr.msrb.gmra.mxu0 %vm551_vm14, %v2642_v21 }
 0x2b6   :  { %753 = vmatpush.msra.mxu0 %v2618_v5 }
 0x2b8   :  { %754 = vmatpush.msra.mxu0 %v2623_v7 }
 0x2ba   :  { %v425_v42 = vpop.f32.mrf.mxu2  ;;  %755 = vmatpush.msra.mxu0 %v2630_v13 }
 0x2bb   :  { %v2662_v43 = vadd.f32 %v2073_v34, %v425_v42  ;;  %v485_v34 = vld [vmem:[#allocation5 + $0x58] sm:$0xff]  ;;  %v475_v42 = vld [vmem:[#allocation5 + $0x8] sm:$0xff] }
 0x2bc   :  { %604 = vmatpush.msrb.mxu3 %v485_v34  ;;  %756 = vmatpush.msra.mxu0 %v2637_v19 }
 0x2be   :  { %605 = vmatpush.msrb.mxu3 %v480_v38  ;;  %942 = vmatpush.msrb.mxu0 %v2618_v5 }
 0x2c0   :  { %606 = vmatpush.msrb.mxu3 %v475_v42  ;;  %943 = vmatpush.msrb.mxu0 %v2623_v7 }
 0x2c1   :  { %2004 = vmatmul.msk.f32.vlgmr.msrb.gmra.mxu3 %vm551_vm14, %v2642_v21 }
 0x2c2   :  { %v2669_v45 = vpop.f32.mrf.mxu2  ;;  %944 = vmatpush.msrb.mxu0 %v2630_v13 }
 0x2c4   :  { %945 = vmatpush.msrb.mxu0 %v2637_v19 }
 0x2ca   :  { %v695_v49 = vpop.f32.mrf.mxu2 }
 0x2cb   :  { %v698_v50 = vadd.f32 %v695_v49, %v589_v48 }
 0x2cd   :  { %2087 = vtanh.f32 %v698_v50  ;;  %v2011_v52 = vmul.f32 -1.442695, %v698_v50  ;;  %v542_v50 = vperm.slane %v2667_v44, 1 }
 0x2cf   :  { %2089 = vpow2.f32 %v2011_v52 }
 0x2d3   :  { %v2088_v51 = vpop.eup %2087 }
 0x2d4   :  { %721 = vrot.lane.b32.xlu1 %v2088_v51, %s2338_s7 }
 0x2d5   :  { %v2090_v53 = vpop.eup %2089 }
 0x2d6   :  { %v702_v54 = vadd.f32 1.0, %v2090_v53 }
 0x2d8   :  { %2091 = vrcp.f32 %v702_v54  ;;  %v714_v60 = vand.u32 2147483648, %v702_v54  ;;  %vm708_vm0 = vweird.f32 %v702_v54  ;;  %v712_v61 = vand.u32 2147483647, %v702_v54 }
 0x2da   :  { %v715_v63 = vor.u32 1.1754944e-38, %v714_v60  ;;  %vm713_vm2 = vcmp.eq.f32.partialorder %v712_v61, 8.507059e+37 }
 0x2de   :  { %v2092_v55 = vpop.eup %2091 }
 0x2df   :  { %v704_v56 = vmul.f32 %v2092_v55, %v702_v54  ;;  %vm709_vm15 = vweird.f32 %v2092_v55 }
 0x2e0   :  { %vm710_vm1 = vmor %vm708_vm0, %vm709_vm15 }
 0x2e1   :  { %v705_v57 = vsub.f32 1.0, %v704_v56 }
 0x2e3   :  { %v706_v58 = vmul.f32 %v2092_v55, %v705_v57 }
 0x2e5   :  { %v707_v59 = vadd.f32 %v2092_v55, %v706_v58 }
 0x2e7   :  { %v711_v62 = vsel %vm710_vm1, %v2092_v55, %v707_v59 }
 0x2e8   :  { %v2673_v1 = vsel %vm713_vm2, %v715_v63, %v711_v62 }
 0x2e9   :  { %v719_v3 = vmul.f32 0.0, %v2673_v1 }
 0x332   :  { %v2702_v49 = vpop.f32.mrf.mxu0 }
 0x333   :  { %v629_v34 = vadd.f32 %v2702_v49, %v543_v33 }
 0x344   :  { %v608_v51 = vpop.f32.mrf.mxu3 }
 0x345   :  { %v609_v52 = vadd.f32 %v608_v51, %v542_v50 }
 0x346   :  { %v722_v0 = vpop.permute.xlu1 %721 }
 0x347   :  { %v724_v2 = vmul.f32 %v722_v0, %v2673_v1 }
 0x349   :  { %726 = vrot.lane.b32.xlu2 %v724_v2, %s2337_s30 }
 0x3a3   :  { %v727_v4 = vpop.permute.xlu2 %726 }
 0x3a4   :  { %v2678_v6 = vadd.f32 %v727_v4, %v719_v3 }
 0x3a6   :  { %2093 = vtanh.f32 %v2678_v6 }
 0x3ac   :  { %v2094_v8 = vpop.eup %2093 }
 0x3ad   :  { %732 = vrot.lane.b32.xlu0 %v2094_v8, %s2338_s7 }
 0x41f   :  { %v733_v46 = vpop.permute.xlu0 %732 }
 0x420   :  { %v735_v47 = vmul.f32 %v733_v46, %v2673_v1 }
 0x422   :  { %737 = vrot.lane.b32.xlu1 %v735_v47, %s2337_s30 }
 0x494   :  { %v2698_v48 = vpop.permute.xlu1 %737 }
 0x495   :  { %2012 = vmatmul.msk.f32.vlgmr.msra.gmra.mxu0 %vm198_vm7, %v2698_v48 }
 0x512   :  { %v758_v53 = vpop.f32.mrf.mxu0 }
 0x513   :  { %v761_v54 = vadd.f32 %v758_v53, %v609_v52 }
 0x515   :  { %2095 = vtanh.f32 %v761_v54  ;;  %v2013_v56 = vmul.f32 -1.442695, %v761_v54 }
 0x517   :  { %2097 = vpow2.f32 %v2013_v56 }
 0x51b   :  { %v2096_v55 = vpop.eup %2095 }
 0x51c   :  { %784 = vrot.lane.b32.xlu2 %v2096_v55, %s2338_s7 }
 0x51d   :  { %v2098_v57 = vpop.eup %2097 }
 0x51e   :  { %v765_v58 = vadd.f32 1.0, %v2098_v57 }
 0x520   :  { %2099 = vrcp.f32 %v765_v58  ;;  %v777_v0 = vand.u32 2147483648, %v765_v58  ;;  %vm771_vm4 = vweird.f32 %v765_v58  ;;  %v775_v1 = vand.u32 2147483647, %v765_v58 }
 0x522   :  { %v778_v3 = vor.u32 1.1754944e-38, %v777_v0  ;;  %vm776_vm8 = vcmp.eq.f32.partialorder %v775_v1, 8.507059e+37  ;;  %v991_v1 = vld [vmem:[%s3075_s10 + $0x18] sm:$0xff] }
 0x526   :  { %v2100_v59 = vpop.eup %2099 }
 0x527   :  { %v767_v60 = vmul.f32 %v2100_v59, %v765_v58  ;;  %vm772_vm3 = vweird.f32 %v2100_v59 }
 0x528   :  { %vm773_vm5 = vmor %vm771_vm4, %vm772_vm3 }
 0x529   :  { %v768_v61 = vsub.f32 1.0, %v767_v60 }
 0x52b   :  { %v769_v62 = vmul.f32 %v2100_v59, %v768_v61  ;;  %v1036_v61 = vld [vmem:[%s3076_s11 + $0x18] sm:$0xff] }
 0x52c   :  { %1049 = vmatpush.msrb.mxu2 %v1036_v61  ;;  %1112 = vmatpush.msra.mxu3 %v1036_v61 }
 0x52d   :  { %v770_v63 = vadd.f32 %v2100_v59, %v769_v62  ;;  %v1035_v62 = vld [vmem:[%s3076_s11 + $0x10] sm:$0xff]  ;;  %1175 = vmatpush.msra.mxu0 %v1036_v61 }
 0x52e   :  { %1050 = vmatpush.msrb.mxu2 %v1035_v62  ;;  %1113 = vmatpush.msra.mxu3 %v1035_v62 }
 0x52f   :  { %v774_v2 = vsel %vm773_vm5, %v2100_v59, %v770_v63  ;;  %1176 = vmatpush.msra.mxu0 %v1035_v62 }
 0x530   :  { %v779_v8 = vsel %vm776_vm8, %v778_v3, %v774_v2  ;;  %v1034_v2 = vld [vmem:[%s3076_s11 + $0x8] sm:$0xff]  ;;  %v990_v3 = vld [vmem:[%s3075_s10 + $0x10] sm:$0xff] }
 0x531   :  { %v782_v10 = vmul.f32 %v779_v8, %v2678_v6  ;;  %v507_v6 = vld [vmem:[#allocation5 + $0x108] sm:$0xff]  ;;  %1051 = vmatpush.msrb.mxu2 %v1034_v2  ;;  %1114 = vmatpush.msra.mxu3 %v1034_v2 }
 0x532   :  { %640 = vmatpush.msrb.mxu1 %v507_v6  ;;  %1177 = vmatpush.msra.mxu0 %v1034_v2 }
 0x534   :  { %641 = vmatpush.msrb.mxu1 %v502_v24 }
 0x536   :  { %642 = vmatpush.msrb.mxu1 %v497_v25 }
 0x538   :  { %643 = vmatpush.msrb.mxu1 %v492_v26 }
 0x53a   :  { %644 = vmatpush.msrb.mxu1 %v487_v27 }
 0x53c   :  { %645 = vmatpush.msrb.mxu1 %v482_v28  ;;  %v544_v28 = vperm.slane %v2667_v44, 3 }
 0x53e   :  { %646 = vmatpush.msrb.mxu1 %v477_v29 }
 0x53f   :  { %2008 = vmatmul.msk.f32.vlgmr.msrb.gmra.mxu1 %vm551_vm14, %v2642_v21 }
 0x540   :  { %816 = vmatpush.msra.mxu1 %v2618_v5 }
 0x542   :  { %817 = vmatpush.msra.mxu1 %v2623_v7 }
 0x544   :  { %818 = vmatpush.msra.mxu1 %v2630_v13 }
 0x546   :  { %819 = vmatpush.msra.mxu1 %v2637_v19 }
 0x548   :  { %879 = vmatpush.msrb.mxu1 %v2618_v5 }
 0x54a   :  { %880 = vmatpush.msrb.mxu1 %v2623_v7 }
 0x54c   :  { %881 = vmatpush.msrb.mxu1 %v2630_v13 }
 0x54e   :  { %882 = vmatpush.msrb.mxu1 %v2637_v19 }
 0x576   :  { %v785_v4 = vpop.permute.xlu2 %784 }
 0x577   :  { %v787_v9 = vmul.f32 %v785_v4, %v779_v8  ;;  %v1033_v4 = vld [vmem:[%s3076_s11] sm:$0xff] }
 0x578   :  { %1052 = vmatpush.msrb.mxu2 %v1033_v4  ;;  %1115 = vmatpush.msra.mxu3 %v1033_v4 }
 0x579   :  { %789 = vrot.lane.b32.xlu0 %v787_v9, %s2337_s30  ;;  %1053 = vmatmul.f32.vlgmr.msrb.gmra.mxu2 %v2336_v11  ;;  %v988_v9 = vld [vmem:[%s3075_s10] sm:$0xff] }
 0x57a   :  { %1178 = vmatpush.msra.mxu0 %v1033_v4  ;;  %1238 = vmatpush.msra.mxu2 %v1036_v61 }
 0x57b   :  { %1301 = vmatpush.msrb.mxu3 %v1036_v61 }
 0x57c   :  { %1239 = vmatpush.msra.mxu2 %v1035_v62 }
 0x57d   :  { %1302 = vmatpush.msrb.mxu3 %v1035_v62 }
 0x57e   :  { %1240 = vmatpush.msra.mxu2 %v1034_v2 }
 0x57f   :  { %1303 = vmatpush.msrb.mxu3 %v1034_v2 }
 0x580   :  { %1241 = vmatpush.msra.mxu2 %v1033_v4 }
 0x581   :  { %1304 = vmatpush.msrb.mxu3 %v1033_v4 }
 0x5bc   :  { %v2728_v32 = vpop.f32.mrf.mxu1 }
 0x5eb   :  { %v790_v14 = vpop.permute.xlu0 %789 }
 0x5ec   :  { %v2708_v15 = vadd.f32 %v790_v14, %v782_v10 }
 0x5ee   :  { %2101 = vtanh.f32 %v2708_v15 }
 0x5f4   :  { %v2102_v16 = vpop.eup %2101 }
 0x5f5   :  { %795 = vrot.lane.b32.xlu1 %v2102_v16, %s2338_s7 }
 0x5fc   :  { %v1054_v17 = vpop.f32.mrf.mxu2 }
 0x667   :  { %v796_v30 = vpop.permute.xlu1 %795 }
 0x668   :  { %v798_v31 = vmul.f32 %v796_v30, %v779_v8  ;;  %v989_v8 = vld [vmem:[%s3075_s10 + $0x8] sm:$0xff] }
 0x66a   :  { %800 = vrot.lane.b32.xlu2 %v798_v31, %s2337_s30 }
 0x6c4   :  { %v2724_v21 = vpop.permute.xlu2 %800 }
 0x6c5   :  { %2014 = vmatmul.msk.f32.vlgmr.msra.gmra.mxu1 %vm198_vm7, %v2724_v21 }
 0x6c6   :  { %1013 = vmatpush.msra.mxu1 %v991_v1 }
 0x6c8   :  { %1014 = vmatpush.msra.mxu1 %v990_v3 }
 0x6ca   :  { %1015 = vmatpush.msra.mxu1 %v989_v8 }
 0x6cc   :  { %1016 = vmatpush.msra.mxu1 %v988_v9 }
 0x742   :  { %v821_v35 = vpop.f32.mrf.mxu1 }
 0x743   :  { %v824_v38 = vadd.f32 %v821_v35, %v629_v34 }
 0x745   :  { %2103 = vtanh.f32 %v824_v38  ;;  %v2015_v7 = vmul.f32 -1.442695, %v824_v38 }
 0x747   :  { %2105 = vpow2.f32 %v2015_v7 }
 0x74b   :  { %v2104_v5 = vpop.eup %2103 }
 0x74c   :  { %847 = vrot.lane.b32.xlu0 %v2104_v5, %s2338_s7 }
 0x74d   :  { %v2106_v13 = vpop.eup %2105 }
 0x74e   :  { %v828_v19 = vadd.f32 1.0, %v2106_v13 }
 0x750   :  { %2107 = vrcp.f32 %v828_v19  ;;  %v840_v51 = vand.u32 2147483648, %v828_v19  ;;  %vm834_vm10 = vweird.f32 %v828_v19  ;;  %v838_v49 = vand.u32 2147483647, %v828_v19 }
 0x752   :  { %v841_v53 = vor.u32 1.1754944e-38, %v840_v51  ;;  %vm839_vm12 = vcmp.eq.f32.partialorder %v838_v49, 8.507059e+37 }
 0x756   :  { %v2108_v40 = vpop.eup %2107 }
 0x757   :  { %v830_v42 = vmul.f32 %v2108_v40, %v828_v19  ;;  %vm835_vm9 = vweird.f32 %v2108_v40 }
 0x758   :  { %vm836_vm11 = vmor %vm834_vm10, %vm835_vm9 }
 0x759   :  { %v831_v46 = vsub.f32 1.0, %v830_v42 }
 0x75b   :  { %v832_v47 = vmul.f32 %v2108_v40, %v831_v46 }
 0x75d   :  { %v833_v50 = vadd.f32 %v2108_v40, %v832_v47 }
 0x75f   :  { %v837_v52 = vsel %vm836_vm11, %v2108_v40, %v833_v50 }
 0x760   :  { %v842_v55 = vsel %vm839_vm12, %v841_v53, %v837_v52 }
 0x761   :  { %v845_v57 = vmul.f32 %v842_v55, %v2708_v15  ;;  %v2774_v15 = vld [vmem:[%s3077_s12] ss:$0 sm:$0xff] }
 0x7be   :  { %v848_v54 = vpop.permute.xlu0 %847 }
 0x7bf   :  { %v850_v56 = vmul.f32 %v848_v54, %v842_v55 }
 0x7c1   :  { %852 = vrot.lane.b32.xlu1 %v850_v56, %s2337_s30 }
 0x833   :  { %v853_v58 = vpop.permute.xlu1 %852 }
 0x834   :  { %v2735_v59 = vadd.f32 %v853_v58, %v845_v57 }
 0x836   :  { %2109 = vtanh.f32 %v2735_v59 }
 0x83c   :  { %v2110_v60 = vpop.eup %2109 }
 0x83d   :  { %858 = vrot.lane.b32.xlu2 %v2110_v60, %s2338_s7 }
 0x897   :  { %v859_v63 = vpop.permute.xlu2 %858 }
 0x898   :  { %v861_v0 = vmul.f32 %v859_v63, %v842_v55 }
 0x89a   :  { %863 = vrot.lane.b32.xlu0 %v861_v0, %s2337_s30 }
 0x90c   :  { %v864_v10 = vpop.permute.xlu0 %863 }
 0x90d   :  { %2016 = vmatmul.msk.f32.vlgmr.msrb.gmra.mxu1 %vm198_vm7, %v864_v10 }
 0x915   :  { %2020 = vmatmul.msk.f32.vlgmr.msra.gmra.mxu1 %vm198_vm7, %v2698_v48 }
 0x91d   :  { %2021 = vmatmul.msk.f32.gmra.mxu1 %vm198_vm7, %v2724_v21  ;;  %v649_v21 = vadd.f32 %v2728_v32, %v544_v28 }
 0x925   :  { %2022 = vmatmul.msk.f32.gmra.mxu1 %vm198_vm7, %v864_v10 }
 0x98a   :  { %v884_v14 = vpop.f32.mrf.mxu1 }
 0x98b   :  { %v887_v34 = vadd.f32 %v884_v14, %v649_v21 }
 0x98d   :  { %v2017_v32 = vmul.f32 -1.442695, %v887_v34 }
 0x992   :  { %v1018_v16 = vpop.f32.mrf.mxu1 }
 0x993   :  { %v1019_v18 = vadd.f32 %v2774_v15, %v1018_v16 }
 0x995   :  { %v1057_v12 = vadd.f32 %v1054_v17, %v1019_v18 }
 0x997   :  { %2111 = vtanh.f32 %v1057_v12  ;;  %v2025_v48 = vmul.f32 -1.442695, %v1057_v12 }
 0x999   :  { %2113 = vpow2.f32 %v2025_v48 }
 0x99a   :  { %v1021_v0 = vpop.f32.mrf.mxu1 }
 0x99b   :  { %v1022_v1 = vadd.f32 %v2774_v15, %v1021_v0 }
 0x99d   :  { %v2112_v20 = vpop.eup %2111 }
 0x99e   :  { %1080 = vrot.lane.b32.xlu1 %v2112_v20, %s2338_s7 }
 0x99f   :  { %v2114_v22 = vpop.eup %2113 }
 0x9a0   :  { %v1061_v23 = vadd.f32 1.0, %v2114_v22 }
 0x9a2   :  { %2115 = vrcp.f32 %v1061_v23  ;;  %v1073_v29 = vand.u32 2147483648, %v1061_v23  ;;  %vm1067_vm15 = vweird.f32 %v1061_v23  ;;  %v1071_v30 = vand.u32 2147483647, %v1061_v23 }
 0x9a3   :  { %2117 = vtanh.f32 %v887_v34 }
 0x9a4   :  { %v1074_v33 = vor.u32 1.1754944e-38, %v1073_v29  ;;  %vm1072_vm1 = vcmp.eq.f32.partialorder %v1071_v30, 8.507059e+37 }
 0x9a8   :  { %v2116_v6 = vpop.eup %2115 }
 0x9a9   :  { %v1063_v24 = vmul.f32 %v2116_v6, %v1061_v23  ;;  %vm1068_vm14 = vweird.f32 %v2116_v6  ;;  %v2118_v7 = vpop.eup %2117 }
 0x9aa   :  { %vm1069_vm0 = vmor %vm1067_vm15, %vm1068_vm14 }
 0x9ab   :  { %v1064_v25 = vsub.f32 1.0, %v1063_v24 }
 0x9ad   :  { %v1065_v26 = vmul.f32 %v2116_v6, %v1064_v25 }
 0x9af   :  { %v1066_v27 = vadd.f32 %v2116_v6, %v1065_v26 }
 0x9b1   :  { %v1070_v31 = vsel %vm1069_vm0, %v2116_v6, %v1066_v27 }
 0x9b2   :  { %v1075_v38 = vsel %vm1072_vm1, %v1074_v33, %v1070_v31 }
 0x9b3   :  { %v1078_v44 = vmul.f32 0.0, %v1075_v38 }
 0xa10   :  { %v1081_v35 = vpop.permute.xlu1 %1080 }
 0xa11   :  { %v1083_v5 = vmul.f32 %v1081_v35, %v1075_v38 }
 0xa13   :  { %1085 = vrot.lane.b32.xlu2 %v1083_v5, %s2337_s30 }
 0xa1b   :  { %910 = vrot.lane.b32.xlu2 %v2118_v7, %s2338_s7  ;;  %v1350_v7 = vld [vmem:[%s3078_s13 + $0x18] sm:$0xff] }
 0xa6d   :  { %v1086_v13 = vpop.permute.xlu2 %1085 }
 0xa6e   :  { %v2782_v19 = vadd.f32 %v1086_v13, %v1078_v44  ;;  %v1349_v44 = vld [vmem:[%s3078_s13 + $0x10] sm:$0xff]  ;;  %v1348_v13 = vld [vmem:[%s3078_s13 + $0x8] sm:$0xff] }
 0xa70   :  { %2119 = vtanh.f32 %v2782_v19 }
 0xa71   :  { %2121 = vpow2.f32 %v2017_v32 }
 0xa75   :  { %v911_v58 = vpop.permute.xlu2 %910 }
 0xa76   :  { %v2120_v40 = vpop.eup %2119 }
 0xa77   :  { %1091 = vrot.lane.b32.xlu0 %v2120_v40, %s2338_s7  ;;  %v2122_v42 = vpop.eup %2121 }
 0xa78   :  { %v891_v46 = vadd.f32 1.0, %v2122_v42  ;;  %v1024_v42 = vpop.f32.mrf.mxu1 }
 0xa7a   :  { %2123 = vrcp.f32 %v891_v46  ;;  %v903_v55 = vand.u32 2147483648, %v891_v46  ;;  %vm897_vm3 = vweird.f32 %v891_v46  ;;  %v901_v56 = vand.u32 2147483647, %v891_v46 }
 0xa7c   :  { %v904_v60 = vor.u32 1.1754944e-38, %v903_v55  ;;  %vm902_vm5 = vcmp.eq.f32.partialorder %v901_v56, 8.507059e+37 }
 0xa80   :  { %v2124_v47 = vpop.eup %2123 }
 0xa81   :  { %v893_v50 = vmul.f32 %v2124_v47, %v891_v46  ;;  %vm898_vm2 = vweird.f32 %v2124_v47  ;;  %v1025_v46 = vadd.f32 %v2774_v15, %v1024_v42 }
 0xa82   :  { %vm899_vm4 = vmor %vm897_vm3, %vm898_vm2 }
 0xa83   :  { %v894_v51 = vsub.f32 1.0, %v893_v50 }
 0xa85   :  { %v895_v49 = vmul.f32 %v2124_v47, %v894_v51 }
 0xa87   :  { %v896_v53 = vadd.f32 %v2124_v47, %v895_v49 }
 0xa89   :  { %v900_v57 = vsel %vm899_vm4, %v2124_v47, %v896_v53 }
 0xa8a   :  { %v905_v61 = vsel %vm902_vm5, %v904_v60, %v900_v57 }
 0xa8b   :  { %v913_v62 = vmul.f32 %v911_v58, %v905_v61  ;;  %v908_v8 = vmul.f32 %v905_v61, %v2735_v59 }
 0xae9   :  { %v1092_v52 = vpop.permute.xlu0 %1091 }
 0xaea   :  { %v1094_v54 = vmul.f32 %v1092_v52, %v1075_v38 }
 0xaec   :  { %1096 = vrot.lane.b32.xlu1 %v1094_v54, %s2337_s30 }
 0xaf4   :  { %915 = vrot.lane.b32.xlu1 %v913_v62, %s2337_s30 }
 0xb5e   :  { %v1097_v63 = vpop.permute.xlu1 %1096 }
 0xb5f   :  { %2026 = vmatmul.msk.f32.vlgmr.msra.gmra.mxu3 %vm198_vm7, %v1097_v63 }
 0xb66   :  { %v916_v4 = vpop.permute.xlu1 %915 }
 0xb67   :  { %v2791_v9 = vadd.f32 %v916_v4, %v908_v8 }
 0xbe2   :  { %v1117_v2 = vpop.f32.mrf.mxu3 }
 0xbe3   :  { %v1120_v3 = vadd.f32 %v1117_v2, %v1022_v1 }
 0xbe5   :  { %2125 = vtanh.f32 %v1120_v3  ;;  %v2027_v16 = vmul.f32 -1.442695, %v1120_v3 }
 0xbe6   :  { %2127 = vtanh.f32 %v2791_v9 }
 0xbe7   :  { %2129 = vpow2.f32 %v2027_v16 }
 0xbeb   :  { %v2126_v10 = vpop.eup %2125 }
 0xbec   :  { %1143 = vrot.lane.b32.xlu0 %v2126_v10, %s2338_s7  ;;  %v2128_v14 = vpop.eup %2127 }
 0xbed   :  { %v2130_v17 = vpop.eup %2129 }
 0xbee   :  { %v1124_v18 = vadd.f32 1.0, %v2130_v17  ;;  %v2831_v17 = vld [vmem:[%s3079_s14 + $0x18] sm:$0xff] }
 0xbef   :  { %1408 = vmatpush.msrb.mxu2 %v2831_v17  ;;  %1471 = vmatpush.msra.mxu3 %v2831_v17 }
 0xbf0   :  { %2131 = vrcp.f32 %v1124_v18  ;;  %v1136_v23 = vand.u32 2147483648, %v1124_v18  ;;  %vm1130_vm9 = vweird.f32 %v1124_v18  ;;  %v1134_v6 = vand.u32 2147483647, %v1124_v18 }
 0xbf2   :  { %v1137_v25 = vor.u32 1.1754944e-38, %v1136_v23  ;;  %vm1135_vm11 = vcmp.eq.f32.partialorder %v1134_v6, 8.507059e+37 }
 0xbf4   :  { %921 = vrot.lane.b32.xlu0 %v2128_v14, %s2338_s7 }
 0xbf6   :  { %v2132_v12 = vpop.eup %2131 }
 0xbf7   :  { %v1126_v20 = vmul.f32 %v2132_v12, %v1124_v18  ;;  %vm1131_vm8 = vweird.f32 %v2132_v12  ;;  %v2836_v18 = vld [vmem:[%s3079_s14 + $0x10] sm:$0xff] }
 0xbf8   :  { %vm1132_vm10 = vmor %vm1130_vm9, %vm1131_vm8  ;;  %1409 = vmatpush.msrb.mxu2 %v2836_v18  ;;  %1472 = vmatpush.msra.mxu3 %v2836_v18 }
 0xbf9   :  { %v1127_v48 = vsub.f32 1.0, %v1126_v20  ;;  %v2850_v20 = vld [vmem:[%s3079_s14] sm:$0xff] }
 0xbfb   :  { %v1128_v22 = vmul.f32 %v2132_v12, %v1127_v48 }
 0xbfd   :  { %v1129_v59 = vadd.f32 %v2132_v12, %v1128_v22 }
 0xbff   :  { %v1133_v24 = vsel %vm1132_vm10, %v2132_v12, %v1129_v59  ;;  %v2843_v12 = vld [vmem:[%s3079_s14 + $0x8] sm:$0xff] }
 0xc00   :  { %v1138_v27 = vsel %vm1135_vm11, %v1137_v25, %v1133_v24  ;;  %1410 = vmatpush.msrb.mxu2 %v2843_v12  ;;  %1473 = vmatpush.msra.mxu3 %v2843_v12  ;;  %v2871_v24 = vld [vmem:[%s3080_s15] ss:$0 sm:$0xff] }
 0xc01   :  { %v1141_v31 = vmul.f32 %v1138_v27, %v2782_v19  ;;  %v1347_v19 = vld [vmem:[%s3078_s13] sm:$0xff] }
 0xc02   :  { %1411 = vmatpush.msrb.mxu2 %v2850_v20  ;;  %1474 = vmatpush.msra.mxu3 %v2850_v20 }
 0xc5e   :  { %v1144_v26 = vpop.permute.xlu0 %1143 }
 0xc5f   :  { %v1146_v28 = vmul.f32 %v1144_v26, %v1138_v27 }
 0xc61   :  { %1148 = vrot.lane.b32.xlu2 %v1146_v28, %s2337_s30 }
 0xc66   :  { %v922_v29 = vpop.permute.xlu0 %921 }
 0xc67   :  { %v924_v30 = vmul.f32 %v922_v29, %v905_v61 }
 0xc69   :  { %926 = vrot.lane.b32.xlu2 %v924_v30, %s2337_s30 }
 0xcbb   :  { %v1149_v21 = vpop.permute.xlu2 %1148 }
 0xcbc   :  { %v1151_v33 = vadd.f32 %v1149_v21, %v1141_v31 }
 0xcbe   :  { %2133 = vtanh.f32 %v1151_v33 }
 0xcc3   :  { %v927_v34 = vpop.permute.xlu2 %926 }
 0xcc4   :  { %v2134_v35 = vpop.eup %2133  ;;  %2018 = vmatmul.msk.f32.vlgmr.msrb.gmra.mxu0 %vm198_vm7, %v927_v34  ;;  %2023 = vmatmul.msk.f32.gmra.mxu1 %vm198_vm7, %v927_v34 }
 0xcc5   :  { %1154 = vrot.lane.b32.xlu1 %v2134_v35, %s2338_s7  ;;  %1372 = vmatpush.msrb.mxu0 %v1350_v7 }
 0xcc7   :  { %1373 = vmatpush.msrb.mxu0 %v1349_v44 }
 0xcc9   :  { %1374 = vmatpush.msrb.mxu0 %v1348_v13 }
 0xccb   :  { %1375 = vmatpush.msrb.mxu0 %v1347_v19 }
 0xd37   :  { %v1155_v38 = vpop.permute.xlu1 %1154 }
 0xd38   :  { %v1157_v5 = vmul.f32 %v1155_v38, %v1138_v27 }
 0xd3a   :  { %1159 = vrot.lane.b32.xlu0 %v1157_v5, %s2337_s30 }
 0xd41   :  { %v2818_v32 = vpop.f32.mrf.mxu0  ;;  %v1027_v22 = vpop.f32.mrf.mxu1 }
 0xd42   :  { %v1028_v59 = vadd.f32 %v2774_v15, %v1027_v22 }
 0xdac   :  { %v1160_v40 = vpop.permute.xlu0 %1159 }
 0xdad   :  { %2028 = vmatmul.msk.f32.vlgmr.msra.gmra.mxu0 %vm198_vm7, %v1160_v40 }
 0xdb5   :  { %2034 = vmatmul.msk.f32.vlgmr.msrb.gmra.mxu0 %vm198_vm7, %v1097_v63 }
 0xdbd   :  { %2035 = vmatmul.msk.f32.gmra.mxu0 %vm198_vm7, %v1160_v40 }
 0xe2a   :  { %v1180_v47 = vpop.f32.mrf.mxu0 }
 0xe2b   :  { %v1183_v50 = vadd.f32 %v1180_v47, %v1025_v46 }
 0xe2d   :  { %2135 = vtanh.f32 %v1183_v50  ;;  %v2029_v49 = vmul.f32 -1.442695, %v1183_v50 }
 0xe2f   :  { %2137 = vpow2.f32 %v2029_v49 }
 0xe33   :  { %v2136_v51 = vpop.eup %2135 }
 0xe34   :  { %1206 = vrot.lane.b32.xlu1 %v2136_v51, %s2338_s7 }
 0xe35   :  { %v2138_v52 = vpop.eup %2137 }
 0xe36   :  { %v1187_v53 = vadd.f32 1.0, %v2138_v52 }
 0xe38   :  { %2139 = vrcp.f32 %v1187_v53  ;;  %v1199_v60 = vand.u32 2147483648, %v1187_v53  ;;  %vm1193_vm14 = vweird.f32 %v1187_v53  ;;  %v1197_v61 = vand.u32 2147483647, %v1187_v53 }
 0xe3a   :  { %v1200_v63 = vor.u32 1.1754944e-38, %v1199_v60  ;;  %vm1198_vm0 = vcmp.eq.f32.partialorder %v1197_v61, 8.507059e+37 }
 0xe3e   :  { %v2140_v54 = vpop.eup %2139 }
 0xe3f   :  { %v1189_v55 = vmul.f32 %v2140_v54, %v1187_v53  ;;  %vm1194_vm12 = vweird.f32 %v2140_v54 }
 0xe40   :  { %vm1195_vm15 = vmor %vm1193_vm14, %vm1194_vm12 }
 0xe41   :  { %v1190_v56 = vsub.f32 1.0, %v1189_v55 }
 0xe43   :  { %v1191_v57 = vmul.f32 %v2140_v54, %v1190_v56 }
 0xe45   :  { %v1192_v58 = vadd.f32 %v2140_v54, %v1191_v57 }
 0xe47   :  { %v1196_v62 = vsel %vm1195_vm15, %v2140_v54, %v1192_v58 }
 0xe48   :  { %v1201_v1 = vsel %vm1198_vm0, %v1200_v63, %v1196_v62 }
 0xe49   :  { %v1204_v3 = vmul.f32 %v1201_v1, %v1151_v33 }
 0xea6   :  { %v1207_v0 = vpop.permute.xlu1 %1206 }
 0xea7   :  { %v1209_v2 = vmul.f32 %v1207_v0, %v1201_v1 }
 0xea9   :  { %1211 = vrot.lane.b32.xlu2 %v1209_v2, %s2337_s30 }
 0xf03   :  { %v1212_v4 = vpop.permute.xlu2 %1211 }
 0xf04   :  { %v2823_v8 = vadd.f32 %v1212_v4, %v1204_v3 }
 0xf06   :  { %2141 = vtanh.f32 %v2823_v8 }
 0xf0c   :  { %v2142_v10 = vpop.eup %2141 }
 0xf0d   :  { %1217 = vrot.lane.b32.xlu0 %v2142_v10, %s2338_s7 }
 0xf7f   :  { %v1218_v14 = vpop.permute.xlu0 %1217 }
 0xf80   :  { %v1220_v16 = vmul.f32 %v1218_v14, %v1201_v1 }
 0xf82   :  { %1222 = vrot.lane.b32.xlu1 %v1220_v16, %s2337_s30 }
 0xff4   :  { %v1223_v48 = vpop.permute.xlu1 %1222 }
 0xff5   :  { %2030 = vmatmul.msk.f32.vlgmr.msra.gmra.mxu2 %vm198_vm7, %v1223_v48  ;;  %2036 = vmatmul.msk.f32.gmra.mxu0 %vm198_vm7, %v1223_v48 }
 0xff6   :  { %1534 = vmatpush.msra.mxu2 %v2831_v17 }
 0xff8   :  { %1535 = vmatpush.msra.mxu2 %v2836_v18 }
 0xffa   :  { %1536 = vmatpush.msra.mxu2 %v2843_v12 }
 0xffc   :  { %1537 = vmatpush.msra.mxu2 %v2850_v20 }
 0xffd   :  { %1412 = vmatmul.f32.vlgmr.msrb.gmra.mxu2 %v2336_v11  ;;  %v1377_v11 = vpop.f32.mrf.mxu0 }
 0xffe   :  { %1660 = vmatpush.msrb.mxu2 %v2831_v17  ;;  %v1378_v25 = vadd.f32 %v2871_v24, %v1377_v11 }
0x1000   :  { %1661 = vmatpush.msrb.mxu2 %v2836_v18 }
0x1002   :  { %1662 = vmatpush.msrb.mxu2 %v2843_v12 }
0x1004   :  { %1663 = vmatpush.msrb.mxu2 %v2850_v20 }
0x1078   :  { %v1243_v23 = vpop.f32.mrf.mxu2 }
0x1079   :  { %v1246_v6 = vadd.f32 %v1243_v23, %v1028_v59 }
0x107b   :  { %2143 = vtanh.f32 %v1246_v6  ;;  %v2031_v30 = vmul.f32 -1.442695, %v1246_v6 }
0x1080   :  { %v1413_v26 = vpop.f32.mrf.mxu2 }
0x1081   :  { %v2144_v27 = vpop.eup %2143  ;;  %v1416_v28 = vadd.f32 %v1413_v26, %v1378_v25  ;;  %v1380_v25 = vpop.f32.mrf.mxu0 }
0x1082   :  { %1269 = vrot.lane.b32.xlu2 %v2144_v27, %s2338_s7  ;;  %v1381_v26 = vadd.f32 %v2871_v24, %v1380_v25 }
0x1083   :  { %2145 = vtanh.f32 %v1416_v28  ;;  %v2039_v38 = vmul.f32 -1.442695, %v1416_v28 }
0x1084   :  { %2147 = vpow2.f32 %v2031_v30 }
0x1089   :  { %v2146_v29 = vpop.eup %2145 }
0x108a   :  { %1439 = vrot.lane.b32.xlu0 %v2146_v29, %s2338_s7  ;;  %v2148_v31 = vpop.eup %2147 }
0x108b   :  { %v1250_v21 = vadd.f32 1.0, %v2148_v31 }
0x108d   :  { %2149 = vrcp.f32 %v1250_v21  ;;  %v1262_v44 = vand.u32 2147483648, %v1250_v21  ;;  %vm1256_vm2 = vweird.f32 %v1250_v21  ;;  %v1260_v13 = vand.u32 2147483647, %v1250_v21 }
0x108e   :  { %2151 = vpow2.f32 %v2039_v38 }
0x108f   :  { %v1263_v42 = vor.u32 1.1754944e-38, %v1262_v44  ;;  %vm1261_vm4 = vcmp.eq.f32.partialorder %v1260_v13, 8.507059e+37 }
0x1093   :  { %v2150_v33 = vpop.eup %2149 }
0x1094   :  { %v1252_v34 = vmul.f32 %v2150_v33, %v1250_v21  ;;  %vm1257_vm1 = vweird.f32 %v2150_v33  ;;  %v2152_v19 = vpop.eup %2151 }
0x1095   :  { %vm1258_vm3 = vmor %vm1256_vm2, %vm1257_vm1  ;;  %v1420_v46 = vadd.f32 1.0, %v2152_v19 }
0x1096   :  { %v1253_v35 = vsub.f32 1.0, %v1252_v34 }
0x1097   :  { %2153 = vrcp.f32 %v1420_v46  ;;  %v1432_v56 = vand.u32 2147483648, %v1420_v46  ;;  %vm1426_vm8 = vweird.f32 %v1420_v46  ;;  %v1430_v57 = vand.u32 2147483647, %v1420_v46 }
0x1098   :  { %v1254_v5 = vmul.f32 %v2150_v33, %v1253_v35 }
0x1099   :  { %v1433_v60 = vor.u32 1.1754944e-38, %v1432_v56  ;;  %vm1431_vm10 = vcmp.eq.f32.partialorder %v1430_v57, 8.507059e+37 }
0x109a   :  { %v1255_v7 = vadd.f32 %v2150_v33, %v1254_v5 }
0x109c   :  { %v1259_v40 = vsel %vm1258_vm3, %v2150_v33, %v1255_v7 }
0x109d   :  { %v1264_v50 = vsel %vm1261_vm4, %v1263_v42, %v1259_v40  ;;  %v2154_v49 = vpop.eup %2153  ;;  %v2223_v42 = vld [vmem:[%s3073_s8] sm:$0x1f]  ;;  %s2339_s8 = smov 96  }
0x109e   :  { %v1422_v52 = vmul.f32 %v2154_v49, %v1420_v46  ;;  %vm1427_vm5 = vweird.f32 %v2154_v49  ;;  %v1267_v0 = vmul.f32 %v1264_v50, %v2823_v8  ;;  %v545_v46 = vperm.slane %v2223_v42, 4 }
0x109f   :  { %vm1428_vm9 = vmor %vm1426_vm8, %vm1427_vm5 }
0x10a0   :  { %v1423_v53 = vsub.f32 1.0, %v1422_v52 }
0x10a2   :  { %v1424_v54 = vmul.f32 %v2154_v49, %v1423_v53 }
0x10a4   :  { %v1425_v55 = vadd.f32 %v2154_v49, %v1424_v54 }
0x10a6   :  { %v1429_v58 = vsel %vm1428_vm9, %v2154_v49, %v1425_v55 }
0x10a7   :  { %v1434_v62 = vsel %vm1431_vm10, %v1433_v60, %v1429_v58  ;;  %v1383_v58 = vpop.f32.mrf.mxu0 }
0x10a8   :  { %v1437_v3 = vmul.f32 0.0, %v1434_v62 }
0x10dc   :  { %v1270_v47 = vpop.permute.xlu2 %1269 }
0x10dd   :  { %v1272_v51 = vmul.f32 %v1270_v47, %v1264_v50 }
0x10df   :  { %1274 = vrot.lane.b32.xlu1 %v1272_v51, %s2337_s30 }
0x10fc   :  { %v1440_v61 = vpop.permute.xlu0 %1439 }
0x10fd   :  { %v1442_v63 = vmul.f32 %v1440_v61, %v1434_v62  ;;  %v1384_v61 = vadd.f32 %v2871_v24, %v1383_v58 }
0x10ff   :  { %1444 = vrot.lane.b32.xlu2 %v1442_v63, %s2337_s30 }
0x1151   :  { %v1275_v1 = vpop.permute.xlu1 %1274 }
0x1152   :  { %v2879_v2 = vadd.f32 %v1275_v1, %v1267_v0 }
0x1154   :  { %2155 = vtanh.f32 %v2879_v2 }
0x1159   :  { %v1445_v4 = vpop.permute.xlu2 %1444 }
0x115a   :  { %v2156_v10 = vpop.eup %2155  ;;  %v1447_v14 = vadd.f32 %v1445_v4, %v1437_v3 }
0x115b   :  { %1280 = vrot.lane.b32.xlu0 %v2156_v10, %s2338_s7 }
0x115c   :  { %2157 = vtanh.f32 %v1447_v14 }
0x1162   :  { %v2158_v16 = vpop.eup %2157 }
0x1163   :  { %1450 = vrot.lane.b32.xlu1 %v2158_v16, %s2338_s7 }
0x11cd   :  { %v1281_v48 = vpop.permute.xlu0 %1280 }
0x11ce   :  { %v1283_v22 = vmul.f32 %v1281_v48, %v1264_v50  ;;  %v669_v50 = vadd.f32 %v2669_v45, %v545_v46 }
0x11d0   :  { %1285 = vrot.lane.b32.xlu2 %v1283_v22, %s2337_s30  ;;  %v950_v51 = vadd.f32 %v2818_v32, %v669_v50 }
0x11d2   :  { %v2019_v56 = vmul.f32 -1.442695, %v950_v51 }
0x11d5   :  { %v1451_v8 = vpop.permute.xlu1 %1450 }
0x11d6   :  { %v1453_v59 = vmul.f32 %v1451_v8, %v1434_v62 }
0x11d8   :  { %1455 = vrot.lane.b32.xlu0 %v1453_v59, %s2337_s30 }
0x122a   :  { %v1286_v23 = vpop.permute.xlu2 %1285 }
0x122b   :  { %2032 = vmatmul.msk.f32.vlgmr.msrb.gmra.mxu3 %vm198_vm7, %v1286_v23  ;;  %2037 = vmatmul.msk.f32.gmra.mxu0 %vm198_vm7, %v1286_v23 }
0x122c   :  { %1597 = vmatpush.msrb.mxu3 %v2831_v17 }
0x122e   :  { %1598 = vmatpush.msrb.mxu3 %v2836_v18 }
0x1230   :  { %1599 = vmatpush.msrb.mxu3 %v2843_v12 }
0x1232   :  { %1600 = vmatpush.msrb.mxu3 %v2850_v20 }
0x124a   :  { %v2892_v6 = vpop.permute.xlu0 %1455 }
0x124b   :  { %2040 = vmatmul.msk.f32.vlgmr.msra.gmra.mxu3 %vm198_vm7, %v2892_v6 }
0x12a8   :  { %v1386_v58 = vpop.f32.mrf.mxu0 }
0x12ae   :  { %v2896_v11 = vpop.f32.mrf.mxu3 }
0x12ce   :  { %v1476_v27 = vpop.f32.mrf.mxu3 }
0x12cf   :  { %v1479_v28 = vadd.f32 %v1476_v27, %v1381_v26 }
0x12d1   :  { %2159 = vtanh.f32 %v1479_v28  ;;  %v2041_v18 = vmul.f32 -1.442695, %v1479_v28 }
0x12d3   :  { %2161 = vpow2.f32 %v2041_v18 }
0x12d7   :  { %v2160_v17 = vpop.eup %2159 }
0x12d8   :  { %1502 = vrot.lane.b32.xlu1 %v2160_v17, %s2338_s7 }
0x12d9   :  { %v2162_v12 = vpop.eup %2161 }
0x12da   :  { %v1483_v20 = vadd.f32 1.0, %v2162_v12 }
0x12dc   :  { %2163 = vrcp.f32 %v1483_v20  ;;  %v1495_v34 = vand.u32 2147483648, %v1483_v20  ;;  %vm1489_vm12 = vweird.f32 %v1483_v20  ;;  %v1493_v35 = vand.u32 2147483647, %v1483_v20 }
0x12de   :  { %v1496_v5 = vor.u32 1.1754944e-38, %v1495_v34  ;;  %vm1494_vm15 = vcmp.eq.f32.partialorder %v1493_v35, 8.507059e+37 }
0x12e2   :  { %v2164_v29 = vpop.eup %2163 }
0x12e3   :  { %v1485_v30 = vmul.f32 %v2164_v29, %v1483_v20  ;;  %vm1490_vm11 = vweird.f32 %v2164_v29 }
0x12e4   :  { %vm1491_vm14 = vmor %vm1489_vm12, %vm1490_vm11 }
0x12e5   :  { %v1486_v31 = vsub.f32 1.0, %v1485_v30 }
0x12e7   :  { %v1487_v21 = vmul.f32 %v2164_v29, %v1486_v31 }
0x12e9   :  { %v1488_v33 = vadd.f32 %v2164_v29, %v1487_v21 }
0x12eb   :  { %v1492_v38 = vsel %vm1491_vm14, %v2164_v29, %v1488_v33 }
0x12ec   :  { %v1497_v44 = vsel %vm1494_vm15, %v1496_v5, %v1492_v38 }
0x12ed   :  { %v1500_v19 = vmul.f32 %v1497_v44, %v1447_v14 }
0x134a   :  { %v1503_v7 = vpop.permute.xlu1 %1502 }
0x134b   :  { %v1505_v13 = vmul.f32 %v1503_v7, %v1497_v44 }
0x134d   :  { %1507 = vrot.lane.b32.xlu2 %v1505_v13, %s2337_s30 }
0x13a7   :  { %v1508_v40 = vpop.permute.xlu2 %1507 }
0x13a8   :  { %v2904_v47 = vadd.f32 %v1508_v40, %v1500_v19 }
0x13aa   :  { %2165 = vtanh.f32 %v2904_v47 }
0x13ab   :  { %2167 = vtanh.f32 %v950_v51 }
0x13ac   :  { %2169 = vpow2.f32 %v2019_v56 }
0x13b0   :  { %v2166_v49 = vpop.eup %2165 }
0x13b1   :  { %1513 = vrot.lane.b32.xlu0 %v2166_v49, %s2338_s7  ;;  %v2168_v52 = vpop.eup %2167 }
0x13b2   :  { %v2170_v45 = vpop.eup %2169 }
0x13b3   :  { %v954_v32 = vadd.f32 1.0, %v2170_v45 }
0x13b5   :  { %2171 = vrcp.f32 %v954_v32  ;;  %v966_v10 = vand.u32 2147483648, %v954_v32  ;;  %vm960_vm1 = vweird.f32 %v954_v32  ;;  %v964_v14 = vand.u32 2147483647, %v954_v32 }
0x13b7   :  { %v967_v22 = vor.u32 1.1754944e-38, %v966_v10  ;;  %vm965_vm3 = vcmp.eq.f32.partialorder %v964_v14, 8.507059e+37 }
0x13b9   :  { %973 = vrot.lane.b32.xlu0 %v2168_v52, %s2338_s7 }
0x13bb   :  { %v2172_v57 = vpop.eup %2171 }
0x13bc   :  { %v956_v60 = vmul.f32 %v2172_v57, %v954_v32  ;;  %vm961_vm0 = vweird.f32 %v2172_v57 }
0x13bd   :  { %vm962_vm2 = vmor %vm960_vm1, %vm961_vm0 }
0x13be   :  { %v957_v62 = vsub.f32 1.0, %v956_v60 }
0x13c0   :  { %v958_v1 = vmul.f32 %v2172_v57, %v957_v62 }
0x13c2   :  { %v959_v3 = vadd.f32 %v2172_v57, %v958_v1 }
0x13c4   :  { %v963_v16 = vsel %vm962_vm2, %v2172_v57, %v959_v3 }
0x13c5   :  { %v968_v8 = vsel %vm965_vm3, %v967_v22, %v963_v16 }
0x13c6   :  { %v971_v35 = vmul.f32 %v968_v8, %v2791_v9 }
0x1423   :  { %v1514_v53 = vpop.permute.xlu0 %1513 }
0x1424   :  { %v1516_v54 = vmul.f32 %v1514_v53, %v1497_v44 }
0x1426   :  { %1518 = vrot.lane.b32.xlu1 %v1516_v54, %s2337_s30 }
0x142b   :  { %v974_v48 = vpop.permute.xlu0 %973 }
0x142c   :  { %v976_v59 = vmul.f32 %v974_v48, %v968_v8 }
0x1498   :  { %v2912_v55 = vpop.permute.xlu1 %1518 }
0x1499   :  { %2042 = vmatmul.msk.f32.vlgmr.msra.gmra.mxu2 %vm198_vm7, %v2912_v55 }
0x151c   :  { %v1539_v63 = vpop.f32.mrf.mxu2 }
0x151d   :  { %v1542_v0 = vadd.f32 %v1539_v63, %v1384_v61  ;;  %v1387_v61 = vadd.f32 %v2871_v24, %v1386_v58 }
0x151f   :  { %2173 = vtanh.f32 %v1542_v0  ;;  %v2043_v23 = vmul.f32 -1.442695, %v1542_v0 }
0x1521   :  { %2175 = vpow2.f32 %v2043_v23 }
0x1525   :  { %v2174_v4 = vpop.eup %2173 }
0x1526   :  { %1565 = vrot.lane.b32.xlu2 %v2174_v4, %s2338_s7 }
0x1527   :  { %v2176_v25 = vpop.eup %2175 }
0x1528   :  { %v1546_v26 = vadd.f32 1.0, %v2176_v25 }
0x152a   :  { %2177 = vrcp.f32 %v1546_v26  ;;  %v1558_v20 = vand.u32 2147483648, %v1546_v26  ;;  %vm1552_vm5 = vweird.f32 %v1546_v26  ;;  %v1556_v29 = vand.u32 2147483647, %v1546_v26 }
0x152c   :  { %v1559_v31 = vor.u32 1.1754944e-38, %v1558_v20  ;;  %vm1557_vm9 = vcmp.eq.f32.partialorder %v1556_v29, 8.507059e+37 }
0x152e   :  { %978 = vrot.lane.b32.xlu2 %v976_v59, %s2337_s30 }
0x1530   :  { %v2178_v27 = vpop.eup %2177 }
0x1531   :  { %v1548_v28 = vmul.f32 %v2178_v27, %v1546_v26  ;;  %vm1553_vm4 = vweird.f32 %v2178_v27 }
0x1532   :  { %vm1554_vm8 = vmor %vm1552_vm5, %vm1553_vm4 }
0x1533   :  { %v1549_v17 = vsub.f32 1.0, %v1548_v28 }
0x1535   :  { %v1550_v18 = vmul.f32 %v2178_v27, %v1549_v17 }
0x1537   :  { %v1551_v12 = vadd.f32 %v2178_v27, %v1550_v18 }
0x1539   :  { %v1555_v30 = vsel %vm1554_vm8, %v2178_v27, %v1551_v12 }
0x153a   :  { %v1560_v33 = vsel %vm1557_vm9, %v1559_v31, %v1555_v30 }
0x153b   :  { %v1563_v44 = vmul.f32 %v1560_v33, %v2904_v47 }
0x1580   :  { %v1566_v21 = vpop.permute.xlu2 %1565 }
0x1581   :  { %v1568_v34 = vmul.f32 %v1566_v21, %v1560_v33 }
0x1583   :  { %1570 = vrot.lane.b32.xlu1 %v1568_v34, %s2337_s30 }
0x1588   :  { %v979_v38 = vpop.permute.xlu2 %978 }
0x1589   :  { %v981_v5 = vadd.f32 %v979_v38, %v971_v35 }
0x158b   :  { %2179 = vtanh.f32 %v981_v5 }
0x1591   :  { %v2180_v7 = vpop.eup %2179 }
0x1592   :  { %984 = vrot.lane.b32.xlu1 %v2180_v7, %s2338_s7 }
0x15f5   :  { %v1571_v13 = vpop.permute.xlu1 %1570 }
0x15f6   :  { %v2923_v19 = vadd.f32 %v1571_v13, %v1563_v44 }
0x15f8   :  { %2181 = vtanh.f32 %v2923_v19 }
0x15fe   :  { %v2182_v40 = vpop.eup %2181 }
0x15ff   :  { %1576 = vrot.lane.b32.xlu0 %v2182_v40, %s2338_s7 }
0x1604   :  { %v985_v42 = vpop.permute.xlu1 %984 }
0x1605   :  { %v987_v46 = vmul.f32 %v985_v42, %v968_v8 }
0x1607   :  { %997 = vrot.lane.b32.xlu0 %v987_v46, %s2337_s30 }
0x1671   :  { %v1577_v9 = vpop.permute.xlu0 %1576 }
0x1672   :  { %v1579_v50 = vmul.f32 %v1577_v9, %v1560_v33 }
0x1674   :  { %1581 = vrot.lane.b32.xlu2 %v1579_v50, %s2337_s30 }
0x1679   :  { %v998_v51 = vpop.permute.xlu0 %997 }
0x167a   :  { %2024 = vmatmul.msk.f32.gmra.mxu1 %vm198_vm7, %v998_v51 }
0x16ce   :  { %v2930_v47 = vpop.permute.xlu2 %1581 }
0x16cf   :  { %2044 = vmatmul.msk.f32.vlgmr.msrb.gmra.mxu3 %vm198_vm7, %v2930_v47 }
0x16f7   :  { %v1030_v49 = vpop.f32.mrf.mxu1 }
0x16f8   :  { %v1031_v52 = vadd.f32 %v2774_v15, %v1030_v49 }
0x16fa   :  { %v1309_v53 = vadd.f32 %v2896_v11, %v1031_v52 }
0x16fc   :  { %2183 = vtanh.f32 %v1309_v53  ;;  %v2033_v56 = vmul.f32 -1.442695, %v1309_v53 }
0x16fe   :  { %2185 = vpow2.f32 %v2033_v56 }
0x1702   :  { %v2184_v54 = vpop.eup %2183 }
0x1703   :  { %1332 = vrot.lane.b32.xlu2 %v2184_v54, %s2338_s7 }
0x1704   :  { %v2186_v45 = vpop.eup %2185 }
0x1705   :  { %v1313_v32 = vadd.f32 1.0, %v2186_v45 }
0x1707   :  { %2187 = vrcp.f32 %v1313_v32  ;;  %v1325_v3 = vand.u32 2147483648, %v1313_v32  ;;  %vm1319_vm11 = vweird.f32 %v1313_v32  ;;  %v1323_v4 = vand.u32 2147483647, %v1313_v32 }
0x1709   :  { %v1326_v16 = vor.u32 1.1754944e-38, %v1325_v3  ;;  %vm1324_vm14 = vcmp.eq.f32.partialorder %v1323_v4, 8.507059e+37 }
0x170d   :  { %v2188_v57 = vpop.eup %2187 }
0x170e   :  { %v1315_v60 = vmul.f32 %v2188_v57, %v1313_v32  ;;  %vm1320_vm10 = vweird.f32 %v2188_v57  ;;  %v2224_v32 = vld [vmem:[#allocation2] ss:$0 sm:$0xff] }
0x170f   :  { %vm1321_vm12 = vmor %vm1319_vm11, %vm1320_vm10 }
0x1710   :  { %v1316_v63 = vsub.f32 1.0, %v1315_v60 }
0x1712   :  { %v1317_v15 = vmul.f32 %v2188_v57, %v1316_v63 }
0x1714   :  { %v1318_v11 = vadd.f32 %v2188_v57, %v1317_v15 }
0x1716   :  { %v1322_v10 = vsel %vm1321_vm12, %v2188_v57, %v1318_v11  ;;  %v417_v57 = vadd.f32 %v2224_v32, %v2656_v37  ;;  %v1769_v32 = vld [vmem:[#allocation7 + $0x118] sm:$0xff] }
0x1717   :  { %v1327_v48 = vsel %vm1324_vm14, %v1326_v16, %v1322_v10 }
0x1718   :  { %v1330_v33 = vmul.f32 %v1327_v48, %v2879_v2  ;;  %v434_v58 = vmul.f32 0.044715, %v417_v57 }
0x1752   :  { %v1602_v62 = vpop.f32.mrf.mxu3 }
0x1753   :  { %v1605_v0 = vadd.f32 %v1602_v62, %v1387_v61  ;;  %v439_v61 = vmul.f32 %v434_v58, %v417_v57 }
0x1755   :  { %2189 = vtanh.f32 %v1605_v0  ;;  %v2045_v8 = vmul.f32 -1.442695, %v1605_v0  ;;  %v444_v63 = vmul.f32 %v439_v61, %v417_v57  ;;  %v1750_v61 = vld [vmem:[#allocation7 + $0x80] sm:$0xff] }
0x1757   :  { %2191 = vpow2.f32 %v2045_v8  ;;  %v449_v0 = vadd.f32 %v444_v63, %v417_v57  ;;  %v1748_v63 = vld [vmem:[#allocation7 + $0x70] sm:$0xff] }
0x1759   :  { %v454_v11 = vmul.f32 0.7978846, %v449_v0  ;;  %v1746_v0 = vld [vmem:[#allocation7 + $0x60] sm:$0xff] }
0x175b   :  { %v2190_v1 = vpop.eup %2189 }
0x175c   :  { %1628 = vrot.lane.b32.xlu1 %v2190_v1, %s2338_s7 }
0x175d   :  { %v1333_v14 = vpop.permute.xlu2 %1332  ;;  %v2192_v59 = vpop.eup %2191 }
0x175e   :  { %v1335_v22 = vmul.f32 %v1333_v14, %v1327_v48  ;;  %v1609_v23 = vadd.f32 1.0, %v2192_v59  ;;  %v429_v59 = vmul.f32 0.5, %v417_v57  ;;  %v1752_v57 = vld [vmem:[#allocation7 + $0x90] sm:$0xff] }
0x1760   :  { %2193 = vrcp.f32 %v1609_v23  ;;  %v1621_v18 = vand.u32 2147483648, %v1609_v23  ;;  %vm1615_vm0 = vweird.f32 %v1609_v23  ;;  %v1619_v12 = vand.u32 2147483647, %v1609_v23 }
0x1762   :  { %v1622_v29 = vor.u32 1.1754944e-38, %v1621_v18  ;;  %vm1620_vm2 = vcmp.eq.f32.partialorder %v1619_v12, 8.507059e+37 }
0x1764   :  { %1337 = vrot.lane.b32.xlu1 %v1335_v22, %s2337_s30 }
0x1766   :  { %v2194_v25 = vpop.eup %2193 }
0x1767   :  { %v1611_v26 = vmul.f32 %v2194_v25, %v1609_v23  ;;  %vm1616_vm15 = vweird.f32 %v2194_v25 }
0x1768   :  { %vm1617_vm1 = vmor %vm1615_vm0, %vm1616_vm15 }
0x1769   :  { %v1612_v27 = vsub.f32 1.0, %v1611_v26  ;;  %v435_v26 = vmul.f32 0.044715, %v2658_v39 }
0x176b   :  { %v1613_v28 = vmul.f32 %v2194_v25, %v1612_v27  ;;  %v440_v27 = vmul.f32 %v435_v26, %v2658_v39  ;;  %v1766_v26 = vld [vmem:[#allocation7 + $0x100] sm:$0xff] }
0x176d   :  { %v1614_v17 = vadd.f32 %v2194_v25, %v1613_v28  ;;  %v445_v28 = vmul.f32 %v440_v27, %v2658_v39  ;;  %v1767_v27 = vld [vmem:[#allocation7 + $0x108] sm:$0xff] }
0x176f   :  { %v1618_v20 = vsel %vm1617_vm1, %v2194_v25, %v1614_v17  ;;  %v450_v17 = vadd.f32 %v445_v28, %v2658_v39 }
0x1770   :  { %v1623_v30 = vsel %vm1620_vm2, %v1622_v29, %v1618_v20 }
0x1771   :  { %v1626_v5 = vmul.f32 %v1623_v30, %v2923_v19  ;;  %v455_v18 = vmul.f32 0.7978846, %v450_v17  ;;  %v1738_v17 = vld [vmem:[#allocation7 + $0x20] sm:$0xff] }
0x17ce   :  { %v1629_v31 = vpop.permute.xlu1 %1628 }
0x17cf   :  { %v1631_v21 = vmul.f32 %v1629_v31, %v1623_v30 }
0x17d1   :  { %1633 = vrot.lane.b32.xlu0 %v1631_v21, %s2337_s30  ;;  %v430_v21 = vmul.f32 0.5, %v2658_v39  ;;  %v1761_v39 = vld [vmem:[#allocation7 + $0xd8] sm:$0xff] }
0x17d6   :  { %v1338_v34 = vpop.permute.xlu1 %1337 }
0x17d7   :  { %v1340_v35 = vadd.f32 %v1338_v34, %v1330_v33 }
0x17d9   :  { %2195 = vtanh.f32 %v1340_v35  ;;  %v436_v35 = vmul.f32 0.044715, %v2660_v41 }
0x17df   :  { %v2196_v38 = vpop.eup %2195 }
0x17e0   :  { %1343 = vrot.lane.b32.xlu0 %v2196_v38, %s2338_s7  ;;  %v441_v38 = vmul.f32 %v436_v35, %v2660_v41 }
0x1843   :  { %v1634_v7 = vpop.permute.xlu0 %1633 }
0x1844   :  { %v1636_v44 = vadd.f32 %v1634_v7, %v1626_v5  ;;  %v1764_v5 = vld [vmem:[#allocation7 + $0xf0] sm:$0xff]  ;;  %v1762_v7 = vld [vmem:[#allocation7 + $0xe0] sm:$0xff] }
0x1845   :  { %1783 = vmatpush.msrb.mxu1 %v1764_v5 }
0x1846   :  { %2197 = vtanh.f32 %v1636_v44 }
0x1847   :  { %1784 = vmatpush.msrb.mxu1 %v1762_v7 }
0x184c   :  { %v2198_v13 = vpop.eup %2197 }
0x184d   :  { %1639 = vrot.lane.b32.xlu2 %v2198_v13, %s2338_s7  ;;  %v1760_v13 = vld [vmem:[#allocation7 + $0xd0] sm:$0xff] }
0x184e   :  { %1785 = vmatpush.msrb.mxu1 %v1760_v13 }
0x1852   :  { %v1344_v40 = vpop.permute.xlu0 %1343 }
0x1853   :  { %v1346_v42 = vmul.f32 %v1344_v40, %v1327_v48  ;;  %v1763_v40 = vld [vmem:[#allocation7 + $0xe8] sm:$0xff] }
0x1855   :  { %1356 = vrot.lane.b32.xlu2 %v1346_v42, %s2337_s30  ;;  %v446_v42 = vmul.f32 %v441_v38, %v2660_v41 }
0x18a7   :  { %v1640_v46 = vpop.permute.xlu2 %1639 }
0x18a8   :  { %v1642_v2 = vmul.f32 %v1640_v46, %v1623_v30  ;;  %v1758_v46 = vld [vmem:[#allocation7 + $0xc0] sm:$0xff] }
0x18a9   :  { %1786 = vmatpush.msrb.mxu1 %v1758_v46 }
0x18aa   :  { %1644 = vrot.lane.b32.xlu1 %v1642_v2, %s2337_s30  ;;  %v1756_v2 = vld [vmem:[#allocation7 + $0xb0] sm:$0xff] }
0x18ab   :  { %1787 = vmatpush.msrb.mxu1 %v1756_v2 }
0x18af   :  { %v1357_v9 = vpop.permute.xlu2 %1356 }
0x18b0   :  { %2038 = vmatmul.msk.f32.gmra.mxu0 %vm198_vm7, %v1357_v9  ;;  %v1772_v9 = vld [vmem:[#allocation7 + $0x130] sm:$0xff] }
0x18b1   :  { %1815 = vmatpush.msra.mxu3 %v1772_v9 }
0x191c   :  { %v2948_v50 = vpop.permute.xlu1 %1644 }
0x191d   :  { %2046 = vmatmul.msk.f32.vlgmr.msrb.gmra.mxu2 %vm198_vm7, %v2948_v50 }
0x192d   :  { %v1389_v19 = vpop.f32.mrf.mxu0 }
0x192e   :  { %v1390_v51 = vadd.f32 %v2871_v24, %v1389_v19  ;;  %v451_v19 = vadd.f32 %v446_v42, %v2660_v41 }
0x1930   :  { %v456_v58 = vmul.f32 0.7978846, %v451_v19 }
0x19a0   :  { %v1665_v49 = vpop.f32.mrf.mxu2 }
0x19a1   :  { %v1668_v52 = vadd.f32 %v1665_v49, %v1390_v51  ;;  %v1757_v51 = vld [vmem:[#allocation7 + $0xb8] sm:$0xff] }
0x19a2   :  { %v1773_v49 = vld [vmem:[#allocation7 + $0x138] sm:$0xff] }
0x19a3   :  { %2199 = vtanh.f32 %v1668_v52  ;;  %v2047_v54 = vmul.f32 -1.442695, %v1668_v52  ;;  %v1754_v52 = vld [vmem:[#allocation7 + $0xa0] sm:$0xff]  ;;  %1855 = vmatpush.msra.mxu2 %v1773_v49 }
0x19a4   :  { %1788 = vmatpush.msrb.mxu1 %v1754_v52 }
0x19a5   :  { %2201 = vpow2.f32 %v2047_v54  ;;  %v1771_v54 = vld [vmem:[#allocation7 + $0x128] sm:$0xff] }
0x19a6   :  { %1856 = vmatpush.msra.mxu2 %v1771_v54  ;;  %1789 = vmatpush.msrb.mxu1 %v1752_v57  ;;  %v1889_v57 = vld [vmem:[%s3083_s18 + $0x40] sm:$0xff] }
0x19a8   :  { %1857 = vmatpush.msra.mxu2 %v1769_v32  ;;  %1790 = vmatpush.msrb.mxu1 %v1750_v61  ;;  %v1890_v32 = vld [vmem:[%s3083_s18 + $0x48] sm:$0xff] }
0x19a9   :  { %v2200_v53 = vpop.eup %2199  ;;  %v1886_v61 = vld [vmem:[%s3083_s18 + $0x28] sm:$0xff] }
0x19aa   :  { %1691 = vrot.lane.b32.xlu0 %v2200_v53, %s2338_s7  ;;  %v1770_v53 = vld [vmem:[#allocation7 + $0x120] sm:$0xff]  ;;  %1791 = vmatpush.msrb.mxu1 %v1748_v63  ;;  %v1885_v63 = vld [vmem:[%s3083_s18 + $0x20] sm:$0xff] }
0x19ab   :  { %v2202_v56 = vpop.eup %2201  ;;  %1816 = vmatpush.msra.mxu3 %v1770_v53  ;;  %1858 = vmatpush.msra.mxu2 %v1767_v27 }
0x19ac   :  { %v1672_v45 = vadd.f32 1.0, %v2202_v56  ;;  %v1755_v56 = vld [vmem:[#allocation7 + $0xa8] sm:$0xff]  ;;  %1792 = vmatpush.msrb.mxu1 %v1746_v0  ;;  %v1898_v0 = vld [vmem:[%s3083_s18 + $0x88] sm:$0xff] }
0x19ae   :  { %2203 = vrcp.f32 %v1672_v45  ;;  %v1684_v3 = vand.u32 2147483648, %v1672_v45  ;;  %vm1678_vm4 = vweird.f32 %v1672_v45  ;;  %v1682_v4 = vand.u32 2147483647, %v1672_v45 }
0x19af   :  { %2205 = vtanh.f32 %v454_v11  ;;  %v1744_v11 = vld [vmem:[#allocation7 + $0x50] sm:$0xff] }
0x19b0   :  { %v1685_v14 = vor.u32 1.1754944e-38, %v1684_v3  ;;  %vm1683_vm8 = vcmp.eq.f32.partialorder %v1682_v4, 8.507059e+37  ;;  %2207 = vtanh.f32 %v455_v18  ;;  %v1742_v3 = vld [vmem:[#allocation7 + $0x40] sm:$0xff]  ;;  %1793 = vmatpush.msrb.mxu1 %v1744_v11  ;;  %v1736_v18 = vld [vmem:[#allocation7 + $0x10] sm:$0xff] }
0x19b1   :  { %v1897_v11 = vld [vmem:[%s3083_s18 + $0x80] sm:$0xff] }
0x19b2   :  { %1794 = vmatpush.msrb.mxu1 %v1742_v3  ;;  %v1882_v3 = vld [vmem:[%s3083_s18 + $0x8] sm:$0xff] }
0x19b4   :  { %v2204_v60 = vpop.eup %2203 }
0x19b5   :  { %v1674_v62 = vmul.f32 %v2204_v60, %v1672_v45  ;;  %vm1679_vm3 = vweird.f32 %v2204_v60  ;;  %v2206_v37 = vpop.eup %2205  ;;  %v1768_v45 = vld [vmem:[#allocation7 + $0x110] sm:$0xff] }
0x19b6   :  { %vm1680_vm5 = vmor %vm1678_vm4, %vm1679_vm3  ;;  %v464_v8 = vadd.f32 1.0, %v2206_v37  ;;  %v2208_v30 = vpop.eup %2207  ;;  %1817 = vmatpush.msra.mxu3 %v1768_v45  ;;  %v1740_v37 = vld [vmem:[#allocation7 + $0x30] sm:$0xff]  ;;  %v1891_v45 = vld [vmem:[%s3083_s18 + $0x50] sm:$0xff] }
0x19b7   :  { %v1675_v24 = vsub.f32 1.0, %v1674_v62  ;;  %v1751_v62 = vld [vmem:[#allocation7 + $0x88] sm:$0xff]  ;;  %1795 = vmatpush.msrb.mxu1 %v1740_v37 }
0x19b8   :  { %v469_v23 = vmul.f32 %v464_v8, %v429_v59  ;;  %1818 = vmatpush.msra.mxu3 %v1766_v26 }
0x19b9   :  { %v1676_v15 = vmul.f32 %v2204_v60, %v1675_v24  ;;  %v1749_v24 = vld [vmem:[#allocation7 + $0x78] sm:$0xff]  ;;  %1796 = vmatpush.msrb.mxu1 %v1738_v17 }
0x19ba   :  { %v1709_v25 = vadd.f32 %v2912_v55, %v469_v23  ;;  %v465_v55 = vadd.f32 1.0, %v2208_v30  ;;  %v437_v23 = vmul.f32 0.044715, %v2662_v43 }
0x19bb   :  { %v1677_v1 = vadd.f32 %v2204_v60, %v1676_v15  ;;  %v1747_v15 = vld [vmem:[#allocation7 + $0x68] sm:$0xff]  ;;  %1797 = vmatpush.msrb.mxu1 %v1736_v18 }
0x19bc   :  { %v470_v33 = vmul.f32 %v465_v55, %v430_v21  ;;  %v442_v28 = vmul.f32 %v437_v23, %v2662_v43 }
0x19bd   :  { %v1681_v10 = vsel %vm1680_vm5, %v2204_v60, %v1677_v1  ;;  %v1753_v60 = vld [vmem:[#allocation7 + $0x98] sm:$0xff] }
0x19be   :  { %v2955_v48 = vsel %vm1683_vm8, %v1685_v14, %v1681_v10  ;;  %v1711_v34 = vadd.f32 %v2930_v47, %v470_v33  ;;  %v1759_v47 = vld [vmem:[#allocation7 + $0xc8] sm:$0xff]  ;;  %v1745_v1 = vld [vmem:[#allocation7 + $0x58] sm:$0xff]  ;;  %v447_v30 = vmul.f32 %v442_v28, %v2662_v43 }
0x19bf   :  { %v1689_v12 = vmul.f32 %v2955_v48, %v1636_v44  ;;  %v1765_v44 = vld [vmem:[#allocation7 + $0xf8] sm:$0xff]  ;;  %v1896_v33 = vld [vmem:[%s3083_s18 + $0x78] sm:$0xff] }
0x19c0   :  { %1823 = vmatpush.msra.mxu0 %v1765_v44  ;;  %v452_v21 = vadd.f32 %v447_v30, %v2662_v43  ;;  %1908 = vmatpush.msrb.mxu3 %v1896_v33 }
0x19c2   :  { %1824 = vmatpush.msra.mxu0 %v1763_v40  ;;  %v457_v38 = vmul.f32 0.7978846, %v452_v21  ;;  %v432_v40 = vmul.f32 0.5, %v2662_v43 }
0x19c4   :  { %1825 = vmatpush.msra.mxu0 %v1761_v39 }
0x19c6   :  { %1826 = vmatpush.msra.mxu0 %v1759_v47  ;;  %v428_v47 = vmul.f32 0.5, %v2654_v36 }
0x19c8   :  { %1827 = vmatpush.msra.mxu0 %v1757_v51 }
0x19ca   :  { %1828 = vmatpush.msra.mxu0 %v1755_v56  ;;  %v1893_v56 = vld [vmem:[%s3083_s18 + $0x60] sm:$0xff] }
0x19cc   :  { %1829 = vmatpush.msra.mxu0 %v1753_v60  ;;  %v1887_v60 = vld [vmem:[%s3083_s18 + $0x30] sm:$0xff] }
0x19ce   :  { %1830 = vmatpush.msra.mxu0 %v1751_v62  ;;  %v1900_v62 = vld [vmem:[%s3083_s18 + $0x98] sm:$0xff] }
0x19d0   :  { %1831 = vmatpush.msra.mxu0 %v1749_v24  ;;  %v1899_v24 = vld [vmem:[%s3083_s18 + $0x90] sm:$0xff] }
0x19d2   :  { %1832 = vmatpush.msra.mxu0 %v1747_v15  ;;  %v1884_v15 = vld [vmem:[%s3083_s18 + $0x18] sm:$0xff] }
0x19d4   :  { %1833 = vmatpush.msra.mxu0 %v1745_v1  ;;  %v1883_v1 = vld [vmem:[%s3083_s18 + $0x10] sm:$0xff] }
0x1a1c   :  { %v1692_v16 = vpop.permute.xlu0 %1691 }
0x1a1d   :  { %v1694_v22 = vmul.f32 %v1692_v16, %v2955_v48 }
0x1a1f   :  { %1696 = vrot.lane.b32.xlu1 %v1694_v22, %s2337_s30  ;;  %v431_v22 = vmul.f32 0.5, %v2660_v41  ;;  %v1741_v41 = vld [vmem:[#allocation7 + $0x38] sm:$0xff] }
0x1a27   :  { %1720 = vrot.lane.b32.xlu1 %v1709_v25, %s2337_s30  ;;  %v1743_v25 = vld [vmem:[#allocation7 + $0x48] sm:$0xff] }
0x1a28   :  { %1834 = vmatpush.msra.mxu0 %v1743_v25 }
0x1a2a   :  { %1835 = vmatpush.msra.mxu0 %v1741_v41 }
0x1a91   :  { %v1697_v20 = vpop.permute.xlu1 %1696 }
0x1a92   :  { %v1699_v29 = vadd.f32 %v1697_v20, %v1689_v12  ;;  %v1739_v12 = vld [vmem:[#allocation7 + $0x28] sm:$0xff]  ;;  %v1737_v20 = vld [vmem:[#allocation7 + $0x18] sm:$0xff] }
0x1a93   :  { %1836 = vmatpush.msra.mxu0 %v1739_v12 }
0x1a94   :  { %2209 = vtanh.f32 %v1699_v29 }
0x1a95   :  { %2211 = vtanh.f32 %v456_v58  ;;  %1837 = vmatpush.msra.mxu0 %v1737_v20  ;;  %v1888_v58 = vld [vmem:[%s3083_s18 + $0x38] sm:$0xff] }
0x1a96   :  { %2213 = vtanh.f32 %v457_v38 }
0x1a99   :  { %v1721_v19 = vpop.permute.xlu1 %1720 }
0x1a9a   :  { %v2210_v31 = vpop.eup %2209 }
0x1a9b   :  { %1702 = vrot.lane.b32.xlu2 %v2210_v31, %s2338_s7  ;;  %v2212_v4 = vpop.eup %2211  ;;  %v1735_v31 = vld [vmem:[#allocation7 + $0x8] sm:$0xff] }
0x1a9c   :  { %v466_v16 = vadd.f32 1.0, %v2212_v4  ;;  %1838 = vmatpush.msra.mxu0 %v1735_v31  ;;  %v2214_v7 = vpop.eup %2213  ;;  %v1881_v4 = vld [vmem:[%s3083_s18] sm:$0xff] }
0x1a9d   :  { %v467_v44 = vadd.f32 1.0, %v2214_v7  ;;  %v2076_v7 = vld [vmem:[%s3084_s19] ss:$0 sm:$0xff] }
0x1a9e   :  { %v471_v8 = vmul.f32 %v466_v16, %v431_v22 }
0x1a9f   :  { %v472_v39 = vmul.f32 %v467_v44, %v432_v40 }
0x1aa0   :  { %v1713_v59 = vadd.f32 %v2948_v50, %v471_v8  ;;  %v1734_v50 = vld [vmem:[#allocation7] sm:$0xff] }
0x1aa1   :  { %1798 = vmatpush.msrb.mxu1 %v1734_v50 }
0x1aa3   :  { %1724 = vrot.lane.b32.xlu2 %v1711_v34, %s2338_s7  ;;  %v1895_v34 = vld [vmem:[%s3083_s18 + $0x70] sm:$0xff]  ;;  %1940 = vmatpush.msra.mxu1 %v1900_v62 }
0x1aa4   :  { %1909 = vmatpush.msrb.mxu3 %v1895_v34 }
0x1aa5   :  { %1941 = vmatpush.msra.mxu1 %v1899_v24 }
0x1aa7   :  { %1942 = vmatpush.msra.mxu1 %v1898_v0 }
0x1aa9   :  { %1943 = vmatpush.msra.mxu1 %v1897_v11 }
0x1af5   :  { %v1703_v10 = vpop.permute.xlu2 %1702 }
0x1af6   :  { %v1705_v14 = vmul.f32 %v1703_v10, %v2955_v48  ;;  %v433_v48 = vmul.f32 0.044715, %v2654_v36  ;;  %v1774_v10 = vld [vmem:[%s3082_s17] sm:$0x3] }
0x1af7   :  { %v1777_v37 = vperm.slane %v1774_v10, 1 }
0x1af8   :  { %1715 = vrot.lane.b32.xlu0 %v1705_v14, %s2337_s30  ;;  %v438_v29 = vmul.f32 %v433_v48, %v2654_v36  ;;  %v1776_v14 = vperm.slane %v1774_v10, 0 }
0x1afa   :  { %v443_v55 = vmul.f32 %v438_v29, %v2654_v36 }
0x1afc   :  { %v448_v35 = vadd.f32 %v443_v55, %v2654_v36  ;;  %v1894_v36 = vld [vmem:[%s3083_s18 + $0x68] sm:$0xff] }
0x1afd   :  { %v1725_v49 = vpop.permute.xlu2 %1724  ;;  %1910 = vmatpush.msrb.mxu3 %v1894_v36 }
0x1afe   :  { %v453_v5 = vmul.f32 0.7978846, %v448_v35 }
0x1aff   :  { %1911 = vmatpush.msrb.mxu3 %v1893_v56 }
0x1b00   :  { %1728 = vrot.lane.b32.xlu0 %v1713_v59, %s2339_s8  ;;  %2215 = vtanh.f32 %v453_v5 }
0x1b06   :  { %v2216_v13 = vpop.eup %2215 }
0x1b07   :  { %v463_v42 = vadd.f32 1.0, %v2216_v13 }
0x1b09   :  { %v468_v9 = vmul.f32 %v463_v42, %v428_v47 }
0x1b0b   :  { %v1707_v51 = vadd.f32 %v2892_v6, %v468_v9  ;;  %v1892_v6 = vld [vmem:[%s3083_s18 + $0x58] sm:$0xff] }
0x1b0c   :  { %1912 = vmatpush.msrb.mxu3 %v1892_v6 }
0x1b0d   :  { %v1731_v52 = vsel %vm198_vm7, %v1707_v51, %v1721_v19 }
0x1b0e   :  { %v1732_v53 = vsel %vm212_vm6, %v1731_v52, %v1725_v49  ;;  %1913 = vmatpush.msrb.mxu3 %v1891_v45 }
0x1b10   :  { %1914 = vmatpush.msrb.mxu3 %v1890_v32 }
0x1b12   :  { %1915 = vmatpush.msrb.mxu3 %v1889_v57 }
0x1b14   :  { %1916 = vmatpush.msrb.mxu3 %v1888_v58 }
0x1b16   :  { %1917 = vmatpush.msrb.mxu3 %v1887_v60 }
0x1b18   :  { %1918 = vmatpush.msrb.mxu3 %v1886_v61 }
0x1b1a   :  { %1919 = vmatpush.msrb.mxu3 %v1885_v63 }
0x1b1c   :  { %1920 = vmatpush.msrb.mxu3 %v1884_v15 }
0x1b1e   :  { %1921 = vmatpush.msrb.mxu3 %v1883_v1 }
0x1b20   :  { %1922 = vmatpush.msrb.mxu3 %v1882_v3 }
0x1b22   :  { %1923 = vmatpush.msrb.mxu3 %v1881_v4 }
0x1b6a   :  { %v1716_v46 = vpop.permute.xlu0 %1715 }
0x1b6b   :  { %v1718_v2 = vadd.f32 %v1716_v46, %v472_v39 }
0x1b6d   :  { %2048 = vmatmul.msk.f32.vlgmr.msra.gmra.mxu3 %vm198_vm7, %v1718_v2  ;;  %2049 = vmatmul.msk.f32.vlgmr.msra.gmra.mxu2 %vm198_vm7, %v1718_v2 }
0x1b72   :  { %v1729_v43 = vpop.permute.xlu0 %1728 }
0x1b73   :  { %v1733_v54 = vsel %vm380_vm13, %v1732_v53, %v1729_v43 }
0x1b74   :  { %1799 = vmatmul.f32.vlgmr.msrb.gmra.mxu1 %v1733_v54  ;;  %1839 = vmatmul.f32.vlgmr.msra.gmra.mxu0 %v1733_v54 }
0x1bf0   :  { %v1820_v23 = vpop.f32.mrf.mxu3  ;;  %v1860_v25 = vpop.f32.mrf.mxu2 }
0x1bf1   :  { %v1800_v16 = vpop.f32.mrf.mxu1  ;;  %v1840_v22 = vpop.f32.mrf.mxu0 }
0x1bf2   :  { %v1801_v8 = vadd.f32 %v1800_v16, %v1776_v14  ;;  %v1841_v59 = vadd.f32 %v1840_v22, %v1777_v37 }
0x1bf4   :  { %v1821_v26 = vadd.f32 %v1820_v23, %v1801_v8  ;;  %v1861_v27 = vadd.f32 %v1860_v25, %v1841_v59 }
0x1bf6   :  { %v1865_v48 = vmul.f32 0.044715, %v1821_v26  ;;  %v1866_v28 = vmul.f32 0.044715, %v1861_v27  ;;  %v1863_v21 = vmul.f32 0.5, %v1821_v26  ;;  %v1864_v34 = vmul.f32 0.5, %v1861_v27 }
0x1bf8   :  { %v1867_v17 = vmul.f32 %v1865_v48, %v1821_v26  ;;  %v1868_v41 = vmul.f32 %v1866_v28, %v1861_v27 }
0x1bfa   :  { %v1870_v18 = vmul.f32 %v1868_v41, %v1861_v27  ;;  %v1869_v12 = vmul.f32 %v1867_v17, %v1821_v26 }
0x1bfc   :  { %v1872_v50 = vadd.f32 %v1870_v18, %v1861_v27  ;;  %v1871_v20 = vadd.f32 %v1869_v12, %v1821_v26 }
0x1bfe   :  { %v1874_v29 = vmul.f32 0.7978846, %v1872_v50  ;;  %v1873_v30 = vmul.f32 0.7978846, %v1871_v20 }
0x1c00   :  { %2217 = vtanh.f32 %v1873_v30 }
0x1c01   :  { %2219 = vtanh.f32 %v1874_v29 }
0x1c06   :  { %v2218_v31 = vpop.eup %2217 }
0x1c07   :  { %v2220_v55 = vpop.eup %2219  ;;  %v1877_v33 = vadd.f32 1.0, %v2218_v31 }
0x1c08   :  { %v1878_v35 = vadd.f32 1.0, %v2220_v55 }
0x1c09   :  { %v1879_v38 = vmul.f32 %v1877_v33, %v1863_v21 }
0x1c0a   :  { %v1880_v5 = vmul.f32 %v1878_v35, %v1864_v34 }
0x1c0b   :  { %1924 = vmatmul.f32.vlgmr.msrb.gmra.mxu3 %v1879_v38 }
0x1c0c   :  { %2050 = vmatmul.msk.f32.vlgmr.msra.gmra.mxu1 %vm198_vm7, %v1880_v5 }
0x1c89   :  { %v1945_v40 = vpop.f32.mrf.mxu1 }
0x1c8e   :  { %v1925_v44 = vpop.f32.mrf.mxu3 }
0x1c8f   :  { %v1926_v13 = vadd.f32 %v2076_v7, %v1925_v44 }
0x1c91   :  { %v1946_v42 = vadd.f32 %v1945_v40, %v1926_v13 }
0x1c93   :  { %v1949_v39 = vmul.f32 0.044715, %v1946_v42  ;;  %v1948_v51 = vmul.f32 0.5, %v1946_v42 }
0x1c95   :  { %v1950_v46 = vmul.f32 %v1949_v39, %v1946_v42 }
0x1c97   :  { %v1951_v47 = vmul.f32 %v1950_v46, %v1946_v42 }
0x1c99   :  { %v1952_v2 = vadd.f32 %v1951_v47, %v1946_v42 }
0x1c9b   :  { %v1953_v9 = vmul.f32 0.7978846, %v1952_v2 }
0x1c9d   :  { %2221 = vtanh.f32 %v1953_v9 }
0x1ca3   :  { %v2222_v19 = vpop.eup %2221 }
0x1ca4   :  { %v1955_v49 = vadd.f32 1.0, %v2222_v19 }
0x1ca6   :  { %v1956_v52 = vmul.f32 %v1955_v49, %v1948_v51 }
0x1ca8   :  { %1957 = vst.msk [vmem:[#allocation8] sm:$0xff] %vm198_vm7, %v1956_v52 }
0x1ca9   :  { %1968 = dma.vmem_to_hbm [thread:$0]  %s1964_s25, 128, %s1966_s27, [#allocation4]  }
0x1caa   :  { %2325 = dma.done.wait [#allocation4], 128  }
0x1cab   :  { %2326 = vsyncadd [#allocation4], 4294967168 }
0x1cac   :  { %1973 = vsyncpa [#allocation3], 1 }
0x1cad   :  { %1974 = vsyncpa [#allocation6], 1 }
0x1cae   :  { %1975 = vsyncpa [#allocation4], 1 }

</bundles_post_ra>
